<compile_context>
chip_gen: v7x
topology: tpu7x:2x2x1
jax: 0.10.0
libtpu: 0.0.40
codegen_flags: <defaults>
</compile_context>

<pallas_src>
import jax
import jax.numpy as jnp
from jax.experimental import pallas as pl
from jax.experimental.pallas import tpu as pltpu

EPS = 1e-5  # nn.BatchNorm2d default eps


def _policy_kernel(wc_ref, gb_ref, x_ref, wl_ref, bl_ref, o_ref):
    """Fused conv1x1 + BN(batch stats) + ReLU + Linear.

    wc_ref: SMEM (C_out, C_in)     conv weight (read as scalars)
    gb_ref: SMEM (2, C_out)        row 0 = gamma, row 1 = beta
    x_ref:  VMEM (N, C_in, HW)     input, HW on lanes
    wl_ref: VMEM (C_out, HW, OUT)  linear weight, pre-permuted to channel-major
    bl_ref: VMEM (1, OUT)          linear bias
    o_ref:  VMEM (N, OUT)          output logits
    """
    n, c_in, hw = x_ref.shape
    c_out = wl_ref.shape[0]
    inv_cnt = 1.0 / float(n * hw)

    # Load each input channel once: (N, HW) slabs with HW on the lane axis.
    xc = [x_ref[:, c, :] for c in range(c_in)]

    acc = None
    for o in range(c_out):
        # --- 1x1 conv, output channel o: VPU scalar-broadcast MAC over C_in.
        h = wc_ref[o, 0] * xc[0]
        for c in range(1, c_in):
            h = h + wc_ref[o, c] * xc[c]
        # Conv bias omitted: train-mode BN mean subtraction cancels it exactly.

        # --- BatchNorm2d (batch stats, biased variance), single pass,
        #     folded into one scale/shift.
        s1 = jnp.sum(jnp.sum(h, axis=1, keepdims=True), axis=0, keepdims=True)      # (1,1)
        s2 = jnp.sum(jnp.sum(h * h, axis=1, keepdims=True), axis=0, keepdims=True)  # (1,1)
        mean = s1 * inv_cnt
        var = s2 * inv_cnt - mean * mean
        scale = gb_ref[0, o] * jax.lax.rsqrt(var + EPS)   # (1,1), rsqrt -> EUP
        shift = gb_ref[1, o] - mean * scale               # (1,1)

        # --- ReLU
        r = jnp.maximum(h * scale + shift, 0.0)           # (N, HW)

        # --- Linear contribution of channel o (MXU).  Activations are already
        #     channel-major, so PyTorch's x.view(N, -1) needs no data movement.
        d = jnp.dot(r, wl_ref[o], preferred_element_type=jnp.float32)  # (N, OUT)
        acc = d if acc is None else acc + d

    o_ref[...] = acc + bl_ref[...]


def prepare_params(params):
    """One-time parameter repack (host/XLA side, outside the hot path)."""
    C_out, C_in = params["conv_w"].shape[0], params["conv_w"].shape[1]
    OUT, F = params["lin_w"].shape
    HW = F // C_out
    return {
        "wc": params["conv_w"].reshape(C_out, C_in),              # (C_out, C_in)
        "gb": jnp.stack([params["bn_w"], params["bn_b"]], 0),     # (2, C_out)
        # lin_w is (OUT, C_out*HW) with feature index c*HW + hw; permute once so
        # the kernel can contract channel-major activations with no transpose.
        "wl": params["lin_w"].T.reshape(C_out, HW, OUT),          # (C_out, HW, OUT)
        "bl": params["lin_b"].reshape(1, OUT),                    # (1, OUT)
        # conv_b intentionally dropped: cancelled by train-mode BN.
    }


def policy_forward(x_nchw, prepped):
    N, C_in, H, W = x_nchw.shape
    HW = H * W
    OUT = prepped["bl"].shape[1]

    x = x_nchw.reshape(N, C_in, HW)  # free, contiguous NCHW reshape

    return pl.pallas_call(
        _policy_kernel,
        out_shape=jax.ShapeDtypeStruct((N, OUT), jnp.float32),
        in_specs=[
            pl.BlockSpec(memory_space=pltpu.MemorySpace.SMEM),  # wc
            pl.BlockSpec(memory_space=pltpu.MemorySpace.SMEM),  # gb (gamma/beta)
            pl.BlockSpec(memory_space=pltpu.MemorySpace.VMEM),  # x
            pl.BlockSpec(memory_space=pltpu.MemorySpace.VMEM),  # wl
            pl.BlockSpec(memory_space=pltpu.MemorySpace.VMEM),  # bl
        ],
        out_specs=pl.BlockSpec(memory_space=pltpu.MemorySpace.VMEM),
    )(prepped["wc"], prepped["gb"], x, prepped["wl"], prepped["bl"])


def reference_forward(x_nchw, params):
    """Pure-JAX reference mirroring the PyTorch module (training-mode BN)."""
    N, C_in, H, W = x_nchw.shape
    C_out = params["conv_w"].shape[0]
    w = params["conv_w"].reshape(C_out, C_in)
    h = jnp.einsum("nchw,oc->nohw", x_nchw, w) + params["conv_b"].reshape(1, C_out, 1, 1)
    mean = jnp.mean(h, axis=(0, 2, 3), keepdims=True)
    var = jnp.mean((h - mean) ** 2, axis=(0, 2, 3), keepdims=True)
    hn = (h - mean) / jnp.sqrt(var + EPS)
    hn = hn * params["bn_w"].reshape(1, C_out, 1, 1) + params["bn_b"].reshape(1, C_out, 1, 1)
    r = jnp.maximum(hn, 0.0)
    flat = r.reshape(N, -1)
    return flat @ params["lin_w"].T + params["lin_b"]


if __name__ == "__main__":
    # Linear(361*C_out, 362) requires 19x19 spatial (Go board).
    N, C_in, C_out, H, W = 2, 4, 2, 19, 19
    F = C_out * H * W

    key = jax.random.PRNGKey(0)
    k_x, k_cw, k_cb, k_lw, k_lb = jax.random.split(key, 5)

    params = {
        # nn.Conv2d(C_in, C_out, [1,1]) -> weight (C_out, C_in, 1, 1), bias (C_out,)
        "conv_w": jax.random.normal(k_cw, (C_out, C_in, 1, 1), jnp.float32) * 0.1,
        "conv_b": jax.random.normal(k_cb, (C_out,), jnp.float32) * 0.1,
        # nn.BatchNorm2d defaults: weight=1, bias=0
        "bn_w": jnp.ones((C_out,), jnp.float32),
        "bn_b": jnp.zeros((C_out,), jnp.float32),
        # nn.Linear(361*C_out, 362) -> weight (362, 361*C_out), bias (362,)
        "lin_w": jax.random.normal(k_lw, (362, F), jnp.float32) * 0.05,
        "lin_b": jax.random.normal(k_lb, (362,), jnp.float32) * 0.05,
    }

    x = jax.random.normal(k_x, (N, C_in, H, W), jnp.float32)

    prepped = prepare_params(params)
    out = policy_forward(x, prepped)
    out = jax.block_until_ready(out)

    ref = reference_forward(x, params)
    assert out.shape == (N, 362), out.shape
    assert jnp.allclose(out, ref, rtol=1e-4, atol=1e-4), float(jnp.max(jnp.abs(out - ref)))

    print("KERNEL_OK")
</pallas_src>

<mosaic_0001>
module attributes {stable_mosaic.version = 11 : i64} {
  func.func @_policy_kernel(%arg0: memref<2x4xf32, #tpu.memory_space<smem>>, %arg1: memref<2x2xf32, #tpu.memory_space<smem>>, %arg2: memref<2x4x361xf32, #tpu.memory_space<vmem>>, %arg3: memref<2x361x362xf32, #tpu.memory_space<vmem>>, %arg4: memref<1x362xf32, #tpu.memory_space<vmem>>, %arg5: memref<2x362xf32, #tpu.memory_space<vmem>>) attributes {dimension_semantics = [], scalar_prefetch = 0 : i64, scratch_operands = 0 : i64, tpu.core_type = #tpu.core_type<tc>} {
    %c0 = arith.constant 0 : index
    %c0_0 = arith.constant 0 : index
    %c0_1 = arith.constant 0 : index
    %0 = vector.load %arg2[%c0, %c0_0, %c0_1] : memref<2x4x361xf32, #tpu.memory_space<vmem>>, vector<2x1x361xf32>
    %1 = vector.shape_cast %0 : vector<2x1x361xf32> to vector<2x361xf32>
    %c0_2 = arith.constant 0 : index
    %c1 = arith.constant 1 : index
    %c0_3 = arith.constant 0 : index
    %2 = vector.load %arg2[%c0_2, %c1, %c0_3] : memref<2x4x361xf32, #tpu.memory_space<vmem>>, vector<2x1x361xf32>
    %3 = vector.shape_cast %2 : vector<2x1x361xf32> to vector<2x361xf32>
    %c0_4 = arith.constant 0 : index
    %c2 = arith.constant 2 : index
    %c0_5 = arith.constant 0 : index
    %4 = vector.load %arg2[%c0_4, %c2, %c0_5] : memref<2x4x361xf32, #tpu.memory_space<vmem>>, vector<2x1x361xf32>
    %5 = vector.shape_cast %4 : vector<2x1x361xf32> to vector<2x361xf32>
    %c0_6 = arith.constant 0 : index
    %c3 = arith.constant 3 : index
    %c0_7 = arith.constant 0 : index
    %6 = vector.load %arg2[%c0_6, %c3, %c0_7] : memref<2x4x361xf32, #tpu.memory_space<vmem>>, vector<2x1x361xf32>
    %7 = vector.shape_cast %6 : vector<2x1x361xf32> to vector<2x361xf32>
    %c0_8 = arith.constant 0 : index
    %c0_9 = arith.constant 0 : index
    %8 = memref.load %arg0[%c0_8, %c0_9] : memref<2x4xf32, #tpu.memory_space<smem>>
    %9 = vector.broadcast %8 : f32 to vector<2x361xf32>
    %10 = arith.mulf %9, %1 : vector<2x361xf32>
    %c0_10 = arith.constant 0 : index
    %c1_11 = arith.constant 1 : index
    %11 = memref.load %arg0[%c0_10, %c1_11] : memref<2x4xf32, #tpu.memory_space<smem>>
    %12 = vector.broadcast %11 : f32 to vector<2x361xf32>
    %13 = arith.mulf %12, %3 : vector<2x361xf32>
    %14 = arith.addf %10, %13 : vector<2x361xf32>
    %c0_12 = arith.constant 0 : index
    %c2_13 = arith.constant 2 : index
    %15 = memref.load %arg0[%c0_12, %c2_13] : memref<2x4xf32, #tpu.memory_space<smem>>
    %16 = vector.broadcast %15 : f32 to vector<2x361xf32>
    %17 = arith.mulf %16, %5 : vector<2x361xf32>
    %18 = arith.addf %14, %17 : vector<2x361xf32>
    %c0_14 = arith.constant 0 : index
    %c3_15 = arith.constant 3 : index
    %19 = memref.load %arg0[%c0_14, %c3_15] : memref<2x4xf32, #tpu.memory_space<smem>>
    %20 = vector.broadcast %19 : f32 to vector<2x361xf32>
    %21 = arith.mulf %20, %7 : vector<2x361xf32>
    %22 = arith.addf %18, %21 : vector<2x361xf32>
    %cst = arith.constant dense<0.000000e+00> : vector<2xf32>
    %23 = vector.multi_reduction <add>, %22, %cst [1] : vector<2x361xf32> to vector<2xf32>
    %24 = vector.shape_cast %23 : vector<2xf32> to vector<2x1xf32>
    %cst_16 = arith.constant dense<0.000000e+00> : vector<1xf32>
    %25 = vector.multi_reduction <add>, %24, %cst_16 [0] : vector<2x1xf32> to vector<1xf32>
    %26 = vector.shape_cast %25 : vector<1xf32> to vector<1x1xf32>
    %27 = arith.mulf %22, %22 : vector<2x361xf32>
    %cst_17 = arith.constant dense<0.000000e+00> : vector<2xf32>
    %28 = vector.multi_reduction <add>, %27, %cst_17 [1] : vector<2x361xf32> to vector<2xf32>
    %29 = vector.shape_cast %28 : vector<2xf32> to vector<2x1xf32>
    %cst_18 = arith.constant dense<0.000000e+00> : vector<1xf32>
    %30 = vector.multi_reduction <add>, %29, %cst_18 [0] : vector<2x1xf32> to vector<1xf32>
    %31 = vector.shape_cast %30 : vector<1xf32> to vector<1x1xf32>
    %cst_19 = arith.constant 0.00138504151 : f32
    %32 = vector.broadcast %cst_19 : f32 to vector<1x1xf32>
    %33 = arith.mulf %26, %32 : vector<1x1xf32>
    %cst_20 = arith.constant 0.00138504151 : f32
    %34 = vector.broadcast %cst_20 : f32 to vector<1x1xf32>
    %35 = arith.mulf %31, %34 : vector<1x1xf32>
    %36 = arith.mulf %33, %33 : vector<1x1xf32>
    %37 = arith.subf %35, %36 : vector<1x1xf32>
    %c0_21 = arith.constant 0 : index
    %c0_22 = arith.constant 0 : index
    %38 = memref.load %arg1[%c0_21, %c0_22] : memref<2x2xf32, #tpu.memory_space<smem>>
    %cst_23 = arith.constant 9.99999974E-6 : f32
    %39 = vector.broadcast %cst_23 : f32 to vector<1x1xf32>
    %40 = arith.addf %37, %39 : vector<1x1xf32>
    %41 = math.rsqrt %40 : vector<1x1xf32>
    %42 = vector.broadcast %38 : f32 to vector<1x1xf32>
    %43 = arith.mulf %42, %41 : vector<1x1xf32>
    %c1_24 = arith.constant 1 : index
    %c0_25 = arith.constant 0 : index
    %44 = memref.load %arg1[%c1_24, %c0_25] : memref<2x2xf32, #tpu.memory_space<smem>>
    %45 = arith.mulf %33, %43 : vector<1x1xf32>
    %46 = vector.broadcast %44 : f32 to vector<1x1xf32>
    %47 = arith.subf %46, %45 : vector<1x1xf32>
    %48 = vector.broadcast %43 : vector<1x1xf32> to vector<2x361xf32>
    %49 = arith.mulf %22, %48 : vector<2x361xf32>
    %50 = vector.broadcast %47 : vector<1x1xf32> to vector<2x361xf32>
    %51 = arith.addf %49, %50 : vector<2x361xf32>
    %cst_26 = arith.constant 0.000000e+00 : f32
    %52 = vector.broadcast %cst_26 : f32 to vector<2x361xf32>
    %53 = arith.maximumf %51, %52 : vector<2x361xf32>
    %c0_27 = arith.constant 0 : index
    %c0_28 = arith.constant 0 : index
    %c0_29 = arith.constant 0 : index
    %54 = vector.load %arg3[%c0_27, %c0_28, %c0_29] : memref<2x361x362xf32, #tpu.memory_space<vmem>>, vector<1x361x362xf32>
    %55 = vector.shape_cast %54 : vector<1x361x362xf32> to vector<361x362xf32>
    %cst_30 = arith.constant dense<0.000000e+00> : vector<2x362xf32>
    %56 = tpu.matmul %53, %55, %cst_30 {dimension_numbers = #tpu.dot_dimension_numbers<[1], [0], [0], [1], [0, 0, 1, 1], [], []>} : vector<2x361xf32>, vector<361x362xf32>, vector<2x362xf32> -> vector<2x362xf32>
    %c1_31 = arith.constant 1 : index
    %c0_32 = arith.constant 0 : index
    %57 = memref.load %arg0[%c1_31, %c0_32] : memref<2x4xf32, #tpu.memory_space<smem>>
    %58 = vector.broadcast %57 : f32 to vector<2x361xf32>
    %59 = arith.mulf %58, %1 : vector<2x361xf32>
    %c1_33 = arith.constant 1 : index
    %c1_34 = arith.constant 1 : index
    %60 = memref.load %arg0[%c1_33, %c1_34] : memref<2x4xf32, #tpu.memory_space<smem>>
    %61 = vector.broadcast %60 : f32 to vector<2x361xf32>
    %62 = arith.mulf %61, %3 : vector<2x361xf32>
    %63 = arith.addf %59, %62 : vector<2x361xf32>
    %c1_35 = arith.constant 1 : index
    %c2_36 = arith.constant 2 : index
    %64 = memref.load %arg0[%c1_35, %c2_36] : memref<2x4xf32, #tpu.memory_space<smem>>
    %65 = vector.broadcast %64 : f32 to vector<2x361xf32>
    %66 = arith.mulf %65, %5 : vector<2x361xf32>
    %67 = arith.addf %63, %66 : vector<2x361xf32>
    %c1_37 = arith.constant 1 : index
    %c3_38 = arith.constant 3 : index
    %68 = memref.load %arg0[%c1_37, %c3_38] : memref<2x4xf32, #tpu.memory_space<smem>>
    %69 = vector.broadcast %68 : f32 to vector<2x361xf32>
    %70 = arith.mulf %69, %7 : vector<2x361xf32>
    %71 = arith.addf %67, %70 : vector<2x361xf32>
    %cst_39 = arith.constant dense<0.000000e+00> : vector<2xf32>
    %72 = vector.multi_reduction <add>, %71, %cst_39 [1] : vector<2x361xf32> to vector<2xf32>
    %73 = vector.shape_cast %72 : vector<2xf32> to vector<2x1xf32>
    %cst_40 = arith.constant dense<0.000000e+00> : vector<1xf32>
    %74 = vector.multi_reduction <add>, %73, %cst_40 [0] : vector<2x1xf32> to vector<1xf32>
    %75 = vector.shape_cast %74 : vector<1xf32> to vector<1x1xf32>
    %76 = arith.mulf %71, %71 : vector<2x361xf32>
    %cst_41 = arith.constant dense<0.000000e+00> : vector<2xf32>
    %77 = vector.multi_reduction <add>, %76, %cst_41 [1] : vector<2x361xf32> to vector<2xf32>
    %78 = vector.shape_cast %77 : vector<2xf32> to vector<2x1xf32>
    %cst_42 = arith.constant dense<0.000000e+00> : vector<1xf32>
    %79 = vector.multi_reduction <add>, %78, %cst_42 [0] : vector<2x1xf32> to vector<1xf32>
    %80 = vector.shape_cast %79 : vector<1xf32> to vector<1x1xf32>
    %cst_43 = arith.constant 0.00138504151 : f32
    %81 = vector.broadcast %cst_43 : f32 to vector<1x1xf32>
    %82 = arith.mulf %75, %81 : vector<1x1xf32>
    %cst_44 = arith.constant 0.00138504151 : f32
    %83 = vector.broadcast %cst_44 : f32 to vector<1x1xf32>
    %84 = arith.mulf %80, %83 : vector<1x1xf32>
    %85 = arith.mulf %82, %82 : vector<1x1xf32>
    %86 = arith.subf %84, %85 : vector<1x1xf32>
    %c0_45 = arith.constant 0 : index
    %c1_46 = arith.constant 1 : index
    %87 = memref.load %arg1[%c0_45, %c1_46] : memref<2x2xf32, #tpu.memory_space<smem>>
    %cst_47 = arith.constant 9.99999974E-6 : f32
    %88 = vector.broadcast %cst_47 : f32 to vector<1x1xf32>
    %89 = arith.addf %86, %88 : vector<1x1xf32>
    %90 = math.rsqrt %89 : vector<1x1xf32>
    %91 = vector.broadcast %87 : f32 to vector<1x1xf32>
    %92 = arith.mulf %91, %90 : vector<1x1xf32>
    %c1_48 = arith.constant 1 : index
    %c1_49 = arith.constant 1 : index
    %93 = memref.load %arg1[%c1_48, %c1_49] : memref<2x2xf32, #tpu.memory_space<smem>>
    %94 = arith.mulf %82, %92 : vector<1x1xf32>
    %95 = vector.broadcast %93 : f32 to vector<1x1xf32>
    %96 = arith.subf %95, %94 : vector<1x1xf32>
    %97 = vector.broadcast %92 : vector<1x1xf32> to vector<2x361xf32>
    %98 = arith.mulf %71, %97 : vector<2x361xf32>
    %99 = vector.broadcast %96 : vector<1x1xf32> to vector<2x361xf32>
    %100 = arith.addf %98, %99 : vector<2x361xf32>
    %cst_50 = arith.constant 0.000000e+00 : f32
    %101 = vector.broadcast %cst_50 : f32 to vector<2x361xf32>
    %102 = arith.maximumf %100, %101 : vector<2x361xf32>
    %c1_51 = arith.constant 1 : index
    %c0_52 = arith.constant 0 : index
    %c0_53 = arith.constant 0 : index
    %103 = vector.load %arg3[%c1_51, %c0_52, %c0_53] : memref<2x361x362xf32, #tpu.memory_space<vmem>>, vector<1x361x362xf32>
    %104 = vector.shape_cast %103 : vector<1x361x362xf32> to vector<361x362xf32>
    %cst_54 = arith.constant dense<0.000000e+00> : vector<2x362xf32>
    %105 = tpu.matmul %102, %104, %cst_54 {dimension_numbers = #tpu.dot_dimension_numbers<[1], [0], [0], [1], [0, 0, 1, 1], [], []>} : vector<2x361xf32>, vector<361x362xf32>, vector<2x362xf32> -> vector<2x362xf32>
    %106 = arith.addf %56, %105 : vector<2x362xf32>
    %c0_55 = arith.constant 0 : index
    %c0_56 = arith.constant 0 : index
    %107 = vector.load %arg4[%c0_55, %c0_56] : memref<1x362xf32, #tpu.memory_space<vmem>>, vector<1x362xf32>
    %108 = vector.broadcast %107 : vector<1x362xf32> to vector<2x362xf32>
    %109 = arith.addf %106, %108 : vector<2x362xf32>
    %c0_57 = arith.constant 0 : index
    %c0_58 = arith.constant 0 : index
    %110 = vector.load %arg5[%c0_57, %c0_58] : memref<2x362xf32, #tpu.memory_space<vmem>>, vector<2x362xf32>
    tpu.vector_store %arg5[%c0_57, %c0_58], %109 {strides = array<i32>} : memref<2x362xf32, #tpu.memory_space<vmem>>, vector<2x362xf32>,
    return
  }
}

</mosaic_0001>

<bundles_post_ra>
// kernel: tpu_custom_call.1
= control target key start
LH: loop header
LB: loop body
LE: loop exit
PB: predicated region body
PF: predicated region fallthrough
CT: control target
= control target key end

     0   :  { %10 = vsyncpa [#allocation4], 0  ;;  %s3066_s0 = inlined_call_operand.vmem [shape: f32[2,4], index: 0, kind: input, shape index: {}]   ;;  %s3067_s1 = inlined_call_operand.vmem [shape: f32[2,2], index: 1, kind: input, shape index: {}]   ;;  %s3068_s2 = inlined_call_operand.vmem [shape: f32[2,4,361], index: 2, kind: input, shape index: {}]   ;;  %s3069_s3 = inlined_call_operand.vmem [shape: f32[2,361,362], index: 3, kind: input, shape index: {}]   ;;  %s3070_s4 = inlined_call_operand.vmem [shape: f32[1,362], index: 4, kind: input, shape index: {}]   ;;  %s3071_s5 = inlined_call_operand.hbm [shape: f32[2,362], index: 5, kind: output, shape index: {}]  }
   0x1   :  { %11 = vsyncpa [#allocation6], 0 }
   0x2   :  { %12 = vsyncpa [#allocation3], 0  ;;  %s19_s20 = sshll.u32 %s3066_s0, 4  ;;  %s29_s23 = sshll.u32 %s3067_s1, 4  ;;  %s20_s20 = int_to_ptr.vmem [resolvable:$true] %s19_s20  ;;  %s30_s23 = int_to_ptr.vmem [resolvable:$true] %s29_s23 }
   0x3   :  { %s1945_s24 = scalar_lea.vmem %s20_s20, 32  ;;  %p1950_p1 = scmp.lt.s32.totalorder %s20_s20, %s20_s20 }
   0x4   :  { %p1946_p0 = scmp.ne.s32.totalorder %s20_s20, %s1945_s24  ;;  %p1951_p2 = scmp.lt.s32.totalorder %s1945_s24, %s1945_s24 }
   0x6   :  { %p1952_p3 = por %p1951_p2, %p1950_p1 }
   0x8   :  { %p1953_p4 = pnand %p1952_p3, %p1946_p0 }
   0xa   :  { %1956 = shalt.err (!%p1953_p4)
}
   0xb   :  { %s1997_s25 = smov [#allocation2]   ;;  %s1957_s26 = scalar_lea.vmem %s30_s23, 32 }
   0xc   :  { %22 = dma.vmem_to_smem %s20_s20, 32, %s1997_s25, [#allocation4]  }
   0xd   :  { %p1958_p5 = scmp.ne.s32.totalorder %s30_s23, %s1957_s26  ;;  %p1962_p6 = scmp.lt.s32.totalorder %s30_s23, %s30_s23 }
   0xe   :  { %p1963_p7 = scmp.lt.s32.totalorder %s1957_s26, %s1957_s26 }
  0x10   :  { %p1964_p8 = por %p1963_p7, %p1962_p6 }
  0x12   :  { %p1965_p9 = pnand %p1964_p8, %p1958_p5 }
  0x14   :  { %1968 = shalt.err (!%p1965_p9)
}
  0x15   :  { %s1998_s0 = smov [#allocation5]  }
  0x16   :  { %32 = dma.vmem_to_smem %s30_s23, 32, %s1998_s0, [#allocation6]  }
  0x17   :  { %1991 = dma.done.wait [#allocation4], 32  }
  0x18   :  { %1992 = vsyncadd [#allocation4], 4294967264 }
  0x19   :  { %1993 = dma.done.wait [#allocation6], 32  }
  0x1a   :  { %1994 = vsyncadd [#allocation6], 4294967264 }
  0x1b   :  { %45 = sfence }
  0x1c   :  { %v1321_v0 = vld [vmem:[%s3069_s3 + $0x458] sm:$0xff]  ;;  %s2045_s28 = sld [smem:[#allocation2 + $0x80]]  ;;  %s2047_s29 = sld [smem:[#allocation2 + $0x81]]  ;;  %v1324_v1 = vld [vmem:[%s3069_s3 + $0x470] sm:$0xff]  ;;  %v89_v3 = vlaneseq  ;;  %v1323_v5 = vld [vmem:[%s3069_s3 + $0x468] sm:$0xff]  ;;  %vm112_vm0 = vcmask 1041408  }
  0x1d   :  { %v1320_v2 = vld [vmem:[%s3069_s3 + $0x450] sm:$0xff]  ;;  %s2055_s9 = sld [smem:[#allocation2 + $0x82]]  ;;  %s2057_s10 = sld [smem:[#allocation2 + $0x83]]  ;;  %v1630_v4 = vpack.c.bf16 %v1324_v1, %v1321_v0  ;;  %v1327_v6 = vld [vmem:[%s3069_s3 + $0x488] sm:$0xff]  ;;  %v1999_v11 = vmov 1966171168  }
  0x1e   :  { %v46_v7 = vld [vmem:[%s3068_s2] ss:$4 sm:$0x7]  ;;  %v1303_v8 = vld [vmem:[%s3068_s2 + $0xc] ss:$4 sm:$0x7]  ;;  %v87_v12 = vunpack.c.l.s4 %v1999_v11  ;;  %v1632_v13 = vpack.c.bf16 %v1323_v5, %v1320_v2 }
  0x1f   :  { %v1304_v9 = vld [vmem:[%s3068_s2 + $0x1] ss:$4 sm:$0x7]  ;;  %v1305_v10 = vld [vmem:[%s3068_s2 + $0xd] ss:$4 sm:$0x7]  ;;  %1631 = vmatprep.subr.bf16.mxu0 %v1630_v4 }
  0x20   :  { %s2077_s23 = sld [smem:[#allocation2]]  ;;  %s2079_s24 = sld [smem:[#allocation2 + $0x1]]  ;;  %v1330_v14 = vld [vmem:[%s3069_s3 + $0x4a0] sm:$0xff]  ;;  %v1329_v17 = vld [vmem:[%s3069_s3 + $0x498] sm:$0xff]  ;;  %1633 = vmatpush1.bf16.msra.mxu0 %v1632_v13  ;;  %v1336_v20 = vld [vmem:[%s3069_s3 + $0x4d0] sm:$0xff]  ;;  %v2106_v23 = vshrl.u32 %v89_v3, 7  ;;  %v88_v27 = vunpack.c.0.s8 %v87_v12 }
  0x21   :  { %v1326_v15 = vld [vmem:[%s3069_s3 + $0x480] sm:$0xff]  ;;  %s2087_s27 = sld [smem:[#allocation2 + $0x2]]  ;;  %v1634_v16 = vpack.c.bf16 %v1330_v14, %v1327_v6  ;;  %v1333_v18 = vld [vmem:[%s3069_s3 + $0x4b8] sm:$0xff]  ;;  %s2095_s11 = sld [smem:[#allocation2 + $0x3]]  ;;  %v1332_v21 = vld [vmem:[%s3069_s3 + $0x4b0] sm:$0xff]  ;;  %vm116_vm1 = vcmask 852992  }
  0x22   :  { %v1636_v19 = vpack.c.bf16 %v1329_v17, %v1326_v15  ;;  %v1335_v22 = vld [vmem:[%s3069_s3 + $0x4c8] sm:$0xff]  ;;  %v1638_v24 = vpack.c.bf16 %v1336_v20, %v1333_v18  ;;  %v331_v28 = vstv %s2045_s28  ;;  %v335_v29 = vstv %s2047_s29  ;;  %s1319_s28 = sld [smem:[#allocation5 + $0x81]]  ;;  %s177_s29 = sld [smem:[#allocation5]] }
  0x23   :  { %1635 = vmatprep.subr.bf16.mxu0 %v1634_v16  ;;  %v1306_v25 = vld [vmem:[%s3068_s2 + $0x2] ss:$4 sm:$0x7]  ;;  %v1307_v26 = vld [vmem:[%s3068_s2 + $0xe] ss:$4 sm:$0x7]  ;;  %v1640_v30 = vpack.c.bf16 %v1335_v22, %v1332_v21  ;;  %v332_v33 = vmul.f32 %v331_v28, %v46_v7  ;;  %v333_v34 = vmul.f32 %v1303_v8, %v331_v28  ;;  %v336_v35 = vmul.f32 %v1304_v9, %v335_v29 }
  0x24   :  { %v1308_v31 = vld [vmem:[%s3068_s2 + $0x3] ss:$4 sm:$0x7]  ;;  %v1309_v32 = vld [vmem:[%s3068_s2 + $0xf] ss:$4 sm:$0x7]  ;;  %v337_v36 = vmul.f32 %v1305_v10, %v335_v29  ;;  %v341_v37 = vstv %s2055_s9  ;;  %v347_v38 = vstv %s2057_s10  ;;  %1637 = vmatpush1.bf16.msra.mxu0 %v1636_v19  ;;  %v2127_v53 = vsub.s32 %v88_v27, %v2106_v23 }
  0x25   :  { %v338_v41 = vadd.f32 %v336_v35, %v332_v33  ;;  %v342_v43 = vmul.f32 %v1306_v25, %v341_v37  ;;  %v343_v44 = vmul.f32 %v1307_v26, %v341_v37  ;;  %1639 = vmatprep.subr.bf16.mxu0 %v1638_v24  ;;  %v348_v45 = vmul.f32 %v1308_v31, %v347_v38  ;;  %s1318_s2 = sld [smem:[#allocation5 + $0x1]]  ;;  %s1313_s9 = sld [smem:[#allocation5 + $0x80]] }
  0x26   :  { %v62_v39 = vstv %s2077_s23  ;;  %v66_v40 = vstv %s2079_s24  ;;  %v339_v42 = vadd.f32 %v337_v36, %v333_v34  ;;  %v349_v46 = vmul.f32 %v1309_v32, %v347_v38 }
  0x27   :  { %v63_v47 = vmul.f32 %v62_v39, %v46_v7  ;;  %v64_v48 = vmul.f32 %v1303_v8, %v62_v39  ;;  %v344_v49 = vadd.f32 %v342_v43, %v338_v41  ;;  %v67_v51 = vmul.f32 %v1304_v9, %v66_v40 }
  0x28   :  { %v345_v50 = vadd.f32 %v343_v44, %v339_v42  ;;  %v68_v52 = vmul.f32 %v1305_v10, %v66_v40  ;;  %v72_v54 = vstv %s2087_s27  ;;  %v78_v55 = vstv %s2095_s11  ;;  %1641 = vmatpush1.bf16.msra.mxu0 %v1640_v30 }
  0x29   :  { %v2131_v56 = vadd.f32 %v348_v45, %v344_v49  ;;  %v69_v58 = vadd.f32 %v67_v51, %v63_v47  ;;  %v73_v60 = vmul.f32 %v1306_v25, %v72_v54  ;;  %v74_v61 = vmul.f32 %v1307_v26, %v72_v54  ;;  %v1339_v54 = vld [vmem:[%s3069_s3 + $0x4e8] sm:$0xff] }
  0x2a   :  { %v2133_v57 = vadd.f32 %v349_v46, %v345_v50  ;;  %v70_v59 = vadd.f32 %v68_v52, %v64_v48  ;;  %v79_v62 = vmul.f32 %v1308_v31, %v78_v55  ;;  %v80_v63 = vmul.f32 %v1309_v32, %v78_v55  ;;  %v1342_v55 = vld [vmem:[%s3069_s3 + $0x500] sm:$0xff] }
  0x2b   :  { %v395_v1 = vmul.f32 %v2131_v56, %v2131_v56  ;;  %v75_v3 = vadd.f32 %v73_v60, %v69_v58  ;;  %v1642_v58 = vpack.c.bf16 %v1342_v55, %v1339_v54  ;;  %v1341_v60 = vld [vmem:[%s3069_s3 + $0x4f8] sm:$0xff]  ;;  %v1383_v54 = vld [vmem:[%s3069_s3 + $0x648] sm:$0xff]  ;;  %vm629_vm2 = vcmask 1040384  }
  0x2c   :  { %v354_v0 = vcombine.low %v2131_v56, %v2133_v57  ;;  %v396_v2 = vmul.f32 %v2133_v57, %v2133_v57  ;;  %v76_v4 = vadd.f32 %v74_v61, %v70_v59  ;;  %v1338_v59 = vld [vmem:[%s3069_s3 + $0x4e0] sm:$0xff]  ;;  %v1429_v55 = vld [vmem:[%s3069_s3 + $0x7b8] sm:$0xff]  ;;  %vm2001_vm3 = vmmov 1  }
  0x2d   :  { %v2142_v7 = vadd.f32 %v79_v62, %v75_v3  ;;  %v1644_v61 = vpack.c.bf16 %v1341_v60, %v1338_v59  ;;  %1643 = vmatprep.subr.bf16.mxu0 %v1642_v58  ;;  %v1345_v62 = vld [vmem:[%s3069_s3 + $0x518] sm:$0xff]  ;;  %v1432_v59 = vld [vmem:[%s3069_s3 + $0x7d0] sm:$0xff]  ;;  %v1387_v60 = vld [vmem:[%s3069_s3 + $0x668] sm:$0xff]  ;;  %vm626_vm5 = vcmask 859136   ;;  %vm2003_vm6 = vmmov 0  }
  0x2e   :  { %v361_v5 = vrot.slane %v354_v0, %v2127_v53  ;;  %v399_v6 = vcombine.low %v395_v1, %v396_v2  ;;  %v2144_v8 = vadd.f32 %v80_v63, %v76_v4  ;;  %v1348_v63 = vld [vmem:[%s3069_s3 + $0x530] sm:$0xff]  ;;  %v1347_v2 = vld [vmem:[%s3069_s3 + $0x528] sm:$0xff]  ;;  %vm2416_vm4 = vmpackc.low %vm629_vm2, %vm2001_vm3  ;;  %vm1282_vm7 = vcmask 1043458  }
  0x2f   :  { %v128_v13 = vmul.f32 %v2142_v7, %v2142_v7  ;;  %1645 = vmatpush1.bf16.msra.mxu0 %v1644_v61  ;;  %v1646_v0 = vpack.c.bf16 %v1348_v63, %v1345_v62  ;;  %v1344_v1 = vld [vmem:[%s3069_s3 + $0x510] sm:$0xff]  ;;  %v1351_v4 = vld [vmem:[%s3069_s3 + $0x548] sm:$0xff]  ;;  %v1390_v61 = vld [vmem:[%s3069_s3 + $0x680] sm:$0xff]  ;;  %v2000_v62 = vmov 0.0   ;;  %v1702_v63 = vpack.c.bf16 %v1432_v59, %v1429_v55 }
  0x30   :  { %v362_v9 = vcombine.high %v361_v5, %v361_v5  ;;  %v369_v10 = vrot.slane %v361_v5, %v2127_v53  ;;  %v406_v11 = vrot.slane %v399_v6, %v2127_v53  ;;  %v85_v12 = vcombine.low %v2142_v7, %v2144_v8  ;;  %v1354_v5 = vld [vmem:[%s3069_s3 + $0x560] sm:$0xff]  ;;  %774 = vmatprep.mubr.f32.mxu1 %v2000_v62  ;;  %vm1283_vm8 = vmor %vm1282_vm7, %vm112_vm0 }
  0x31   :  { %v129_v14 = vmul.f32 %v2144_v8, %v2144_v8  ;;  %v1648_v3 = vpack.c.bf16 %v1347_v2, %v1344_v1  ;;  %1647 = vmatprep.subr.bf16.mxu0 %v1646_v0  ;;  %v1650_v6 = vpack.c.bf16 %v1354_v5, %v1351_v4  ;;  %v1674_v0 = vpack.c.bf16 %v1390_v61, %v1387_v60  ;;  %v1428_v1 = vld [vmem:[%s3069_s3 + $0x7b0] sm:$0xff]  ;;  %v1431_v2 = vld [vmem:[%s3069_s3 + $0x7c8] sm:$0xff]  ;;  %v1389_v4 = vld [vmem:[%s3069_s3 + $0x678] sm:$0xff] }
  0x32   :  { %v376_v15 = vrot.slane %v362_v9, %v2127_v53  ;;  %v377_v16 = vcombine.high %v369_v10, %v369_v10  ;;  %v381_v17 = vsel %vm112_vm0, %v369_v10, 0.0  ;;  %v407_v18 = vcombine.high %v406_v11, %v406_v11  ;;  %v1350_v9 = vld [vmem:[%s3069_s3 + $0x540] sm:$0xff]  ;;  %v1353_v10 = vld [vmem:[%s3069_s3 + $0x558] sm:$0xff]  ;;  %v1435_v5 = vld [vmem:[%s3069_s3 + $0x7e8] sm:$0xff] }
  0x33   :  { %v414_v19 = vrot.slane %v406_v11, %v2127_v53  ;;  %v92_v20 = vrot.slane %v85_v12, %v2127_v53  ;;  %v132_v21 = vcombine.low %v128_v13, %v129_v14  ;;  %1649 = vmatpush1.bf16.msra.mxu0 %v1648_v3  ;;  %v1652_v11 = vpack.c.bf16 %v1353_v10, %v1350_v9  ;;  %v1357_v12 = vld [vmem:[%s3069_s3 + $0x578] sm:$0xff]  ;;  %v1360_v13 = vld [vmem:[%s3069_s3 + $0x590] sm:$0xff]  ;;  %v1386_v3 = vld [vmem:[%s3069_s3 + $0x660] sm:$0xff] }
  0x34   :  { %v382_v22 = vsel %vm112_vm0, %v376_v15, 0.0  ;;  %v384_v24 = vsel %vm116_vm1, %v377_v16, 0.0  ;;  %v421_v25 = vrot.slane %v407_v18, %v2127_v53  ;;  %1651 = vmatprep.subr.bf16.mxu0 %v1650_v6  ;;  %v1654_v14 = vpack.c.bf16 %v1360_v13, %v1357_v12  ;;  %v1356_v15 = vld [vmem:[%s3069_s3 + $0x570] sm:$0xff]  ;;  %v1359_v16 = vld [vmem:[%s3069_s3 + $0x588] sm:$0xff]  ;;  %v1438_v6 = vld [vmem:[%s3069_s3 + $0x800] sm:$0xff] }
  0x35   :  { %v383_v26 = vadd.f32 %v382_v22, %v381_v17  ;;  %v422_v27 = vcombine.high %v414_v19, %v414_v19  ;;  %v426_v28 = vsel %vm112_vm0, %v414_v19, 0.0  ;;  %v93_v29 = vcombine.high %v92_v20, %v92_v20  ;;  %v1363_v18 = vld [vmem:[%s3069_s3 + $0x5a8] sm:$0xff]  ;;  %v1366_v19 = vld [vmem:[%s3069_s3 + $0x5c0] sm:$0xff]  ;;  %v1365_v22 = vld [vmem:[%s3069_s3 + $0x5b8] sm:$0xff] }
  0x36   :  { %v427_v30 = vsel %vm112_vm0, %v421_v25, 0.0  ;;  %v100_v31 = vrot.slane %v92_v20, %v2127_v53  ;;  %v139_v32 = vrot.slane %v132_v21, %v2127_v53  ;;  %v1656_v17 = vpack.c.bf16 %v1359_v16, %v1356_v15  ;;  %v1362_v21 = vld [vmem:[%s3069_s3 + $0x5a0] sm:$0xff]  ;;  %v1369_v25 = vld [vmem:[%s3069_s3 + $0x5d8] sm:$0xff]  ;;  %v1396_v12 = vld [vmem:[%s3069_s3 + $0x6b0] sm:$0xff] }
  0x37   :  { %v385_v33 = vadd.f32 %v384_v24, %v383_v26  ;;  %v428_v34 = vadd.f32 %v427_v30, %v426_v28  ;;  %v429_v35 = vsel %vm116_vm1, %v422_v27, 0.0  ;;  %v107_v36 = vrot.slane %v93_v29, %v2127_v53  ;;  %1653 = vmatpush1.bf16.msra.mxu0 %v1652_v11  ;;  %v1372_v26 = vld [vmem:[%s3069_s3 + $0x5f0] sm:$0xff]  ;;  %v1371_v29 = vld [vmem:[%s3069_s3 + $0x5e8] sm:$0xff]  ;;  %v1393_v11 = vld [vmem:[%s3069_s3 + $0x698] sm:$0xff] }
  0x38   :  { %v108_v37 = vcombine.high %v100_v31, %v100_v31  ;;  %v113_v38 = vsel %vm112_vm0, %v100_v31, 0.0  ;;  %v140_v39 = vcombine.high %v139_v32, %v139_v32  ;;  %v147_v40 = vrot.slane %v139_v32, %v2127_v53  ;;  %1655 = vmatprep.subr.bf16.mxu0 %v1654_v14  ;;  %v1368_v28 = vld [vmem:[%s3069_s3 + $0x5d0] sm:$0xff]  ;;  %v1417_v31 = vld [vmem:[%s3069_s3 + $0x758] sm:$0xff]  ;;  %v1434_v13 = vld [vmem:[%s3069_s3 + $0x7e0] sm:$0xff] }
  0x39   :  { %386 = vadd.xlane.f32.xlu0 %v385_v33  ;;  %v430_v41 = vadd.f32 %v429_v35, %v428_v34  ;;  %v114_v42 = vsel %vm112_vm0, %v107_v36, 0.0  ;;  %v1658_v20 = vpack.c.bf16 %v1366_v19, %v1363_v18  ;;  %v1660_v24 = vpack.c.bf16 %v1365_v22, %v1362_v21  ;;  %v1420_v32 = vld [vmem:[%s3069_s3 + $0x770] sm:$0xff]  ;;  %v1375_v34 = vld [vmem:[%s3069_s3 + $0x608] sm:$0xff]  ;;  %v1378_v35 = vld [vmem:[%s3069_s3 + $0x620] sm:$0xff] }
  0x3a   :  { %v115_v43 = vadd.f32 %v114_v42, %v113_v38  ;;  %v117_v44 = vsel %vm116_vm1, %v108_v37, 0.0  ;;  %v154_v45 = vrot.slane %v140_v39, %v2127_v53  ;;  %v155_v46 = vcombine.high %v147_v40, %v147_v40  ;;  %v1416_v36 = vld [vmem:[%s3069_s3 + $0x750] sm:$0xff]  ;;  %v1419_v38 = vld [vmem:[%s3069_s3 + $0x768] sm:$0xff]  ;;  %v1374_v39 = vld [vmem:[%s3069_s3 + $0x600] sm:$0xff] }
  0x3b   :  { %v159_v47 = vsel %vm112_vm0, %v147_v40, 0.0  ;;  %1657 = vmatpush1.bf16.msra.mxu0 %v1656_v17  ;;  %v1662_v27 = vpack.c.bf16 %v1372_v26, %v1369_v25  ;;  %v1664_v30 = vpack.c.bf16 %v1371_v29, %v1368_v28  ;;  %v1694_v33 = vpack.c.bf16 %v1420_v32, %v1417_v31  ;;  %v1377_v40 = vld [vmem:[%s3069_s3 + $0x618] sm:$0xff]  ;;  %v1392_v17 = vld [vmem:[%s3069_s3 + $0x690] sm:$0xff]  ;;  %v1395_v18 = vld [vmem:[%s3069_s3 + $0x6a8] sm:$0xff] }
  0x3c   :  { %v118_v48 = vadd.f32 %v117_v44, %v115_v43  ;;  %v160_v49 = vsel %vm112_vm0, %v154_v45, 0.0  ;;  %v162_v50 = vsel %vm116_vm1, %v155_v46, 0.0  ;;  %1659 = vmatprep.subr.bf16.mxu0 %v1658_v20  ;;  %v1666_v37 = vpack.c.bf16 %v1378_v35, %v1375_v34  ;;  %v1423_v43 = vld [vmem:[%s3069_s3 + $0x788] sm:$0xff]  ;;  %v1426_v44 = vld [vmem:[%s3069_s3 + $0x7a0] sm:$0xff]  ;;  %v1381_v45 = vld [vmem:[%s3069_s3 + $0x638] sm:$0xff] }
  0x3d   :  { %431 = vadd.xlane.f32.xlu0 %v430_v41  ;;  %v161_v51 = vadd.f32 %v160_v49, %v159_v47  ;;  %1695 = vmatprep.subr.bf16.mxu1 %v1694_v33  ;;  %v1696_v41 = vpack.c.bf16 %v1419_v38, %v1416_v36  ;;  %v1668_v42 = vpack.c.bf16 %v1377_v40, %v1374_v39  ;;  %v1384_v47 = vld [vmem:[%s3069_s3 + $0x650] sm:$0xff]  ;;  %v1425_v49 = vld [vmem:[%s3069_s3 + $0x798] sm:$0xff]  ;;  %v1399_v21 = vld [vmem:[%s3069_s3 + $0x6c8] sm:$0xff]  ;;  %vm1284_vm9 = vcmask 865284  }
  0x3e   :  { %119 = vadd.xlane.f32.xlu1 %v118_v48  ;;  %v1698_v46 = vpack.c.bf16 %v1426_v44, %v1423_v43  ;;  %v1422_v48 = vld [vmem:[%s3069_s3 + $0x780] sm:$0xff]  ;;  %v1704_v9 = vpack.c.bf16 %v1431_v2, %v1428_v1  ;;  %v1676_v10 = vpack.c.bf16 %v1389_v4, %v1386_v3  ;;  %v1706_v14 = vpack.c.bf16 %v1438_v6, %v1435_v5  ;;  %v1437_v16 = vld [vmem:[%s3069_s3 + $0x7f8] sm:$0xff]  ;;  %v1444_v20 = vld [vmem:[%s3069_s3 + $0x830] sm:$0xff] }
  0x3f   :  { %v163_v52 = vadd.f32 %v162_v50, %v161_v51  ;;  %1661 = vmatpush1.bf16.msra.mxu0 %v1660_v24  ;;  %1697 = vmatpush1.bf16.msra.mxu1 %v1696_v41  ;;  %v1670_v50 = vpack.c.bf16 %v1384_v47, %v1381_v45  ;;  %v1700_v51 = vpack.c.bf16 %v1425_v49, %v1422_v48  ;;  %v1441_v19 = vld [vmem:[%s3069_s3 + $0x818] sm:$0xff]  ;;  %v1402_v22 = vld [vmem:[%s3069_s3 + $0x6e0] sm:$0xff]  ;;  %v1440_v26 = vld [vmem:[%s3069_s3 + $0x810] sm:$0xff] }
  0x40   :  { %1663 = vmatprep.subr.bf16.mxu0 %v1662_v27  ;;  %1699 = vmatprep.subr.bf16.mxu1 %v1698_v46  ;;  %v1678_v15 = vpack.c.bf16 %v1396_v12, %v1393_v11  ;;  %v1708_v24 = vpack.c.bf16 %v1437_v16, %v1434_v13  ;;  %v1680_v25 = vpack.c.bf16 %v1395_v18, %v1392_v17  ;;  %v1443_v27 = vld [vmem:[%s3069_s3 + $0x828] sm:$0xff]  ;;  %v1401_v31 = vld [vmem:[%s3069_s3 + $0x6d8] sm:$0xff]  ;;  %v1450_v33 = vld [vmem:[%s3069_s3 + $0x860] sm:$0xff] }
  0x41   :  { %v1710_v28 = vpack.c.bf16 %v1444_v20, %v1441_v19  ;;  %v1682_v29 = vpack.c.bf16 %v1402_v22, %v1399_v21  ;;  %v1447_v32 = vld [vmem:[%s3069_s3 + $0x848] sm:$0xff]  ;;  %v1405_v34 = vld [vmem:[%s3069_s3 + $0x6f8] sm:$0xff]  ;;  %v1408_v35 = vld [vmem:[%s3069_s3 + $0x710] sm:$0xff]  ;;  %v1712_v36 = vpack.c.bf16 %v1443_v27, %v1440_v26 }
  0x42   :  { %164 = vadd.xlane.f32.xlu1 %v163_v52  ;;  %v1380_v52 = vld [vmem:[%s3069_s3 + $0x630] sm:$0xff]  ;;  %v1446_v38 = vld [vmem:[%s3069_s3 + $0x840] sm:$0xff]  ;;  %v1449_v39 = vld [vmem:[%s3069_s3 + $0x858] sm:$0xff]  ;;  %v1714_v40 = vpack.c.bf16 %v1450_v33, %v1447_v32  ;;  %v1686_v41 = vpack.c.bf16 %v1408_v35, %v1405_v34 }
  0x43   :  { %1665 = vmatpush1.bf16.msra.mxu0 %v1664_v30  ;;  %v1672_v58 = vpack.c.bf16 %v1383_v54, %v1380_v52  ;;  %1701 = vmatpush1.bf16.msra.mxu1 %v1700_v51  ;;  %v1398_v30 = vld [vmem:[%s3069_s3 + $0x6c0] sm:$0xff]  ;;  %v1407_v43 = vld [vmem:[%s3069_s3 + $0x708] sm:$0xff]  ;;  %v1453_v44 = vld [vmem:[%s3069_s3 + $0x878] sm:$0xff]  ;;  %v1716_v48 = vpack.c.bf16 %v1449_v39, %v1446_v38 }
  0x44   :  { %1667 = vmatprep.subr.bf16.mxu0 %v1666_v37  ;;  %1703 = vmatprep.subr.bf16.mxu1 %v1702_v63  ;;  %v1684_v37 = vpack.c.bf16 %v1401_v31, %v1398_v30  ;;  %v1456_v45 = vld [vmem:[%s3069_s3 + $0x890] sm:$0x1]  ;;  %v1411_v46 = vld [vmem:[%s3069_s3 + $0x728] sm:$0xff]  ;;  %v1414_v47 = vld [vmem:[%s3069_s3 + $0x740] sm:$0xff] }
  0x45   :  { %v1718_v51 = vpack.c.bf16 %v1456_v45, %v1453_v44  ;;  %v1690_v52 = vpack.c.bf16 %v1414_v47, %v1411_v46  ;;  %v1455_v54 = vld [vmem:[%s3069_s3 + $0x888] sm:$0x1]  ;;  %v1410_v55 = vld [vmem:[%s3069_s3 + $0x720] sm:$0xff]  ;;  %v1373_v61 = vld [vmem:[%s3069_s3 + $0x5f8] sm:$0xff] }
  0x46   :  { %v1370_v60 = vld [vmem:[%s3069_s3 + $0x5e0] sm:$0xff]  ;;  %v193_v2 = vld [vmem:[%s3069_s3 + $0x8] sm:$0xff]  ;;  %vm1285_vm10 = vmor %vm1284_vm9, %vm1283_vm8 }
  0x47   :  { %1669 = vmatpush1.bf16.msra.mxu0 %v1668_v42  ;;  %1705 = vmatpush1.bf16.msra.mxu1 %v1704_v9  ;;  %v1404_v42 = vld [vmem:[%s3069_s3 + $0x6f0] sm:$0xff]  ;;  %v1724_v1 = vpack.c.bf16 %v1373_v61, %v1370_v60  ;;  %v196_v3 = vld [vmem:[%s3069_s3 + $0x20] sm:$0xff] }
  0x48   :  { %1671 = vmatprep.subr.bf16.mxu0 %v1670_v50  ;;  %1707 = vmatprep.subr.bf16.mxu1 %v1706_v14  ;;  %v1688_v49 = vpack.c.bf16 %v1407_v43, %v1404_v42  ;;  %v1452_v50 = vld [vmem:[%s3069_s3 + $0x870] sm:$0xff]  ;;  %v1778_v4 = vpack.c.bf16 %v196_v3, %v193_v2  ;;  %v1242_v59 = vld [vmem:[%s3070_s4] sm:$0x7]  ;;  %s2005_s4 = smov [#allocation7]  }
  0x49   :  { %v1721_v63 = vpack.c.bf16 %v1455_v54, %v1452_v50  ;;  %v447_v50 = vstv %s1318_s2  ;;  %v451_v54 = vstv %s1319_s28  ;;  %s1293_s28 = sshll.u32 %s2005_s4, 4  ;;  %s1294_s28 = int_to_ptr.vmem [resolvable:$true] %s1293_s28 }
  0x4a   :  { %p1974_p11 = scmp.lt.s32.totalorder %s1294_s28, %s1294_s28 }
  0x4b   :  { %1673 = vmatpush1.bf16.msra.mxu0 %v1672_v58  ;;  %1709 = vmatpush1.bf16.msra.mxu1 %v1708_v24  ;;  %v1413_v58 = vld [vmem:[%s3069_s3 + $0x738] sm:$0xff] }
  0x4c   :  { %1675 = vmatprep.subr.bf16.mxu0 %v1674_v0  ;;  %1711 = vmatprep.subr.bf16.mxu1 %v1710_v28  ;;  %v1692_v0 = vpack.c.bf16 %v1413_v58, %v1410_v55  ;;  %v180_v58 = vstv %s177_s29  ;;  %s1969_s29 = scalar_lea.vmem %s1294_s28, 96 }
  0x4d   :  { %p1970_p10 = scmp.ne.s32.totalorder %s1294_s28, %s1969_s29  ;;  %p1975_p12 = scmp.lt.s32.totalorder %s1969_s29, %s1969_s29 }
  0x4f   :  { %1677 = vmatpush1.bf16.msra.mxu0 %v1676_v10  ;;  %1713 = vmatpush1.bf16.msra.mxu1 %v1712_v36  ;;  %p1976_p13 = por %p1975_p12, %p1974_p11 }
  0x50   :  { %1679 = vmatprep.subr.bf16.mxu0 %v1678_v15  ;;  %1715 = vmatprep.subr.bf16.mxu1 %v1714_v40 }
  0x51   :  { %p1977_p0 = pnand %p1976_p13, %p1970_p10 }
  0x53   :  { %1681 = vmatpush1.bf16.msra.mxu0 %v1680_v25  ;;  %1717 = vmatpush1.bf16.msra.mxu1 %v1716_v48 }
  0x54   :  { %1683 = vmatprep.subr.bf16.mxu0 %v1682_v29  ;;  %1720 = vmatprep.subr.msk.bf16.mxu1 %vm2416_vm4, %v1718_v51 }
  0x57   :  { %1685 = vmatpush1.bf16.msra.mxu0 %v1684_v37  ;;  %1723 = vmatpush1.bf16.msk.msra.mxu1 %vm2416_vm4, %v1721_v63 }
  0x58   :  { %1687 = vmatprep.subr.bf16.mxu0 %v1686_v41  ;;  %1725 = vmatprep.subr.bf16.mxu1 %v1724_v1 }
  0x5b   :  { %1689 = vmatpush1.bf16.msra.mxu0 %v1688_v49 }
  0x5c   :  { %1691 = vmatprep.subr.bf16.mxu0 %v1690_v52 }
  0x5f   :  { %1693 = vmatpush1.bf16.msra.mxu0 %v1692_v0 }
  0x60   :  { %1779 = vmatprep.subr.bf16.mxu0 %v1778_v4  ;;  %v184_v4 = vstv %s1313_s9 }
  0xc6   :  { %v387_v5 = vpop.xlane.xlu0 %386 }
  0xc7   :  { %v388_v6 = vsel %vm112_vm0, %v387_v5, 0.0 }
  0xc8   :  { %v389_v9 = vrot.slane %v388_v6, 4 }
  0xca   :  { %v390_v10 = vadd.f32 %v389_v9, %v388_v6  ;;  %v432_v11 = vpop.xlane.xlu0 %431 }
  0xcb   :  { %v433_v12 = vsel %vm112_vm0, %v432_v11, 0.0  ;;  %v120_v13 = vpop.xlane.xlu1 %119 }
  0xcc   :  { %v391_v14 = vrot.slane %v390_v10, 2  ;;  %v434_v15 = vrot.slane %v433_v12, 4  ;;  %v121_v16 = vsel %vm112_vm0, %v120_v13, 0.0 }
  0xcd   :  { %v122_v17 = vrot.slane %v121_v16, 4 }
  0xce   :  { %v392_v18 = vadd.f32 %v391_v14, %v390_v10  ;;  %v435_v19 = vadd.f32 %v434_v15, %v433_v12 }
  0xcf   :  { %v123_v20 = vadd.f32 %v122_v17, %v121_v16  ;;  %v165_v21 = vpop.xlane.xlu1 %164  ;;  %v1376_v17 = vld [vmem:[%s3069_s3 + $0x610] sm:$0xff] }
  0xd0   :  { %v393_v22 = vrot.slane %v392_v18, 1  ;;  %v436_v24 = vrot.slane %v435_v19, 2  ;;  %v166_v25 = vsel %vm112_vm0, %v165_v21, 0.0 }
  0xd1   :  { %v124_v26 = vrot.slane %v123_v20, 2  ;;  %v167_v27 = vrot.slane %v166_v25, 4 }
  0xd2   :  { %v394_v28 = vadd.f32 %v393_v22, %v392_v18  ;;  %v437_v29 = vadd.f32 %v436_v24, %v435_v19  ;;  %v1379_v22 = vld [vmem:[%s3069_s3 + $0x628] sm:$0xff]  ;;  %v199_v24 = vld [vmem:[%s3069_s3 + $0x38] sm:$0xff] }
  0xd3   :  { %v125_v30 = vadd.f32 %v124_v26, %v123_v20  ;;  %v168_v31 = vadd.f32 %v167_v27, %v166_v25  ;;  %v202_v25 = vld [vmem:[%s3069_s3 + $0x50] sm:$0xff] }
  0xd4   :  { %v440_v32 = vmul.f32 0.0013850415, %v394_v28  ;;  %v438_v33 = vrot.slane %v437_v29, 1 }
  0xd5   :  { %v126_v34 = vrot.slane %v125_v30, 1  ;;  %v169_v35 = vrot.slane %v168_v31, 2 }
  0xd6   :  { %v439_v36 = vadd.f32 %v438_v33, %v437_v29  ;;  %v442_v39 = vmul.f32 %v440_v32, %v440_v32  ;;  %v198_v33 = vld [vmem:[%s3069_s3 + $0x30] sm:$0xff] }
  0xd7   :  { %v127_v37 = vadd.f32 %v126_v34, %v125_v30  ;;  %v170_v38 = vadd.f32 %v169_v35, %v168_v31  ;;  %v1328_v31 = vld [vmem:[%s3069_s3 + $0x490] sm:$0xff]  ;;  %v1728_v34 = vpack.c.bf16 %v1379_v22, %v1376_v17  ;;  %v1782_v35 = vpack.c.bf16 %v202_v25, %v199_v24  ;;  %v223_v17 = vld [vmem:[%s3069_s3 + $0xf8] sm:$0xff]  ;;  %v1355_v25 = vld [vmem:[%s3069_s3 + $0x568] sm:$0xff] }
  0xd8   :  { %v441_v40 = vmul.f32 0.0013850415, %v439_v36  ;;  %v201_v36 = vld [vmem:[%s3069_s3 + $0x48] sm:$0xff]  ;;  %v1352_v24 = vld [vmem:[%s3069_s3 + $0x550] sm:$0xff] }
  0xd9   :  { %v173_v41 = vmul.f32 0.0013850415, %v127_v37  ;;  %v171_v42 = vrot.slane %v170_v38, 1  ;;  %v1382_v37 = vld [vmem:[%s3069_s3 + $0x640] sm:$0xff] }
  0xda   :  { %v443_v43 = vsub.f32 %v441_v40, %v442_v39  ;;  %v205_v40 = vld [vmem:[%s3069_s3 + $0x68] sm:$0xff] }
  0xdb   :  { %v175_v44 = vmul.f32 %v173_v41, %v173_v41  ;;  %v172_v45 = vadd.f32 %v171_v42, %v170_v38  ;;  %v1385_v38 = vld [vmem:[%s3069_s3 + $0x658] sm:$0xff] }
  0xdc   :  { %v445_v46 = vadd.f32 1e-05, %v443_v43 }
  0xdd   :  { %v174_v47 = vmul.f32 0.0013850415, %v172_v45  ;;  %v1732_v45 = vpack.c.bf16 %v1385_v38, %v1382_v37  ;;  %v1358_v37 = vld [vmem:[%s3069_s3 + $0x580] sm:$0xff]  ;;  %v1361_v38 = vld [vmem:[%s3069_s3 + $0x598] sm:$0xff] }
  0xde   :  { %1941 = vrsqrt.f32 %v445_v46  ;;  %v1334_v46 = vld [vmem:[%s3069_s3 + $0x4c0] sm:$0xff] }
  0xdf   :  { %v176_v48 = vsub.f32 %v174_v47, %v175_v44  ;;  %v1784_v44 = vpack.c.bf16 %v201_v36, %v198_v33  ;;  %v1337_v47 = vld [vmem:[%s3069_s3 + $0x4d8] sm:$0xff]  ;;  %v232_v33 = vld [vmem:[%s3069_s3 + $0x140] sm:$0xff] }
  0xe1   :  { %v178_v49 = vadd.f32 1e-05, %v176_v48  ;;  %v204_v48 = vld [vmem:[%s3069_s3 + $0x60] sm:$0xff] }
  0xe3   :  { %1943 = vrsqrt.f32 %v178_v49 }
  0xe8   :  { %v1942_v51 = vpop.eup %1941 }
  0xe9   :  { %v448_v52 = vmul.f32 %v1942_v51, %v447_v50  ;;  %v207_v50 = vld [vmem:[%s3069_s3 + $0x78] sm:$0xff]  ;;  %v1388_v51 = vld [vmem:[%s3069_s3 + $0x670] sm:$0xff] }
  0xeb   :  { %v450_v55 = vmul.f32 %v448_v52, %v440_v32  ;;  %v453_v63 = vmul.f32 %v448_v52, %v2131_v56  ;;  %v454_v0 = vmul.f32 %v448_v52, %v2133_v57  ;;  %v1322_v56 = vld [vmem:[%s3069_s3 + $0x460] sm:$0xff]  ;;  %v1325_v57 = vld [vmem:[%s3069_s3 + $0x478] sm:$0xff]  ;;  %v1331_v32 = vld [vmem:[%s3069_s3 + $0x4a8] sm:$0xff] }
  0xec   :  { %v1726_v26 = vpack.c.bf16 %v1325_v57, %v1322_v56  ;;  %v1730_v42 = vpack.c.bf16 %v1331_v32, %v1328_v31  ;;  %v1391_v52 = vld [vmem:[%s3069_s3 + $0x688] sm:$0xff]  ;;  %v219_v57 = vld [vmem:[%s3069_s3 + $0xd8] sm:$0xff] }
  0xed   :  { %v1944_v60 = vpop.eup %1943  ;;  %v452_v61 = vsub.f32 %v451_v54, %v450_v55  ;;  %v211_v55 = vld [vmem:[%s3069_s3 + $0x98] sm:$0xff]  ;;  %v229_v32 = vld [vmem:[%s3069_s3 + $0x128] sm:$0xff] }
  0xee   :  { %v181_v1 = vmul.f32 %v1944_v60, %v180_v58  ;;  %v214_v58 = vld [vmem:[%s3069_s3 + $0xb0] sm:$0xff]  ;;  %v1734_v60 = vpack.c.bf16 %v1337_v47, %v1334_v46  ;;  %v1409_v31 = vld [vmem:[%s3069_s3 + $0x718] sm:$0xff]  ;;  %v1750_v47 = vpack.c.bf16 %v1361_v38, %v1358_v37  ;;  %v1442_v38 = vld [vmem:[%s3069_s3 + $0x820] sm:$0xff] }
  0xef   :  { %v455_v2 = vadd.f32 %v453_v63, %v452_v61  ;;  %v456_v3 = vadd.f32 %v454_v0, %v452_v61  ;;  %v1788_v61 = vpack.c.bf16 %v207_v50, %v204_v48  ;;  %v1736_v63 = vpack.c.bf16 %v1391_v52, %v1388_v51  ;;  %v1340_v0 = vld [vmem:[%s3069_s3 + $0x4f0] sm:$0xff]  ;;  %v1367_v51 = vld [vmem:[%s3069_s3 + $0x5c8] sm:$0xff] }
  0xf0   :  { %v183_v5 = vmul.f32 %v181_v1, %v173_v41  ;;  %v186_v6 = vmul.f32 %v181_v1, %v2142_v7  ;;  %v187_v9 = vmul.f32 %v181_v1, %v2144_v8  ;;  %v192_v7 = vld [vmem:[%s3069_s3] sm:$0xff]  ;;  %v195_v8 = vld [vmem:[%s3069_s3 + $0x18] sm:$0xff]  ;;  %v1343_v1 = vld [vmem:[%s3069_s3 + $0x508] sm:$0xff] }
  0xf1   :  { %v457_v10 = vmax.f32 %v455_v2, 0.0  ;;  %v458_v11 = vmax.f32 %v456_v3, 0.0  ;;  %v1780_v30 = vpack.c.bf16 %v195_v8, %v192_v7  ;;  %v208_v41 = vld [vmem:[%s3069_s3 + $0x80] sm:$0xff]  ;;  %v210_v2 = vld [vmem:[%s3069_s3 + $0x90] sm:$0xff]  ;;  %v1790_v3 = vpack.c.bf16 %v214_v58, %v211_v55  ;;  %v1403_v8 = vld [vmem:[%s3069_s3 + $0x6e8] sm:$0xff] }
  0xf2   :  { %v185_v12 = vsub.f32 %v184_v4, %v183_v5  ;;  %v1786_v49 = vpack.c.bf16 %v208_v41, %v205_v40  ;;  %v213_v4 = vld [vmem:[%s3069_s3 + $0xa8] sm:$0xff]  ;;  %v1394_v5 = vld [vmem:[%s3069_s3 + $0x6a0] sm:$0xff]  ;;  %v1400_v7 = vld [vmem:[%s3069_s3 + $0x6d0] sm:$0xff]  ;;  %v1802_v41 = vpack.c.bf16 %v232_v33, %v229_v32 }
  0xf3   :  { %v600_v13 = vcombine.low %v457_v10, %v458_v11  ;;  %v220_v10 = vld [vmem:[%s3069_s3 + $0xe0] sm:$0xff]  ;;  %v1738_v11 = vpack.c.bf16 %v1343_v1, %v1340_v0  ;;  %v1744_v22 = vpack.c.bf16 %v1403_v8, %v1400_v7  ;;  %v238_v46 = vld [vmem:[%s3069_s3 + $0x170] sm:$0xff]  ;;  %v237_v58 = vld [vmem:[%s3069_s3 + $0x168] sm:$0xff] }
  0xf4   :  { %v188_v14 = vadd.f32 %v186_v6, %v185_v12  ;;  %v189_v15 = vadd.f32 %v187_v9, %v185_v12  ;;  %v1397_v6 = vld [vmem:[%s3069_s3 + $0x6b8] sm:$0xff]  ;;  %v217_v9 = vld [vmem:[%s3069_s3 + $0xc8] sm:$0xff]  ;;  %v1792_v12 = vpack.c.bf16 %v213_v4, %v210_v2  ;;  %v228_v40 = vld [vmem:[%s3069_s3 + $0x120] sm:$0xff] }
  0xf5   :  { %v607_v16 = vrot.slane %v600_v13, %v2127_v53  ;;  %v1740_v13 = vpack.c.bf16 %v1397_v6, %v1394_v5  ;;  %v1794_v56 = vpack.c.bf16 %v220_v10, %v217_v9  ;;  %v1364_v50 = vld [vmem:[%s3069_s3 + $0x5b0] sm:$0xff]  ;;  %v1418_v1 = vld [vmem:[%s3069_s3 + $0x760] sm:$0xff]  ;;  %v1421_v2 = vld [vmem:[%s3069_s3 + $0x778] sm:$0xff] }
  0xf6   :  { %v190_v18 = vmax.f32 %v188_v14, 0.0  ;;  %v191_v19 = vmax.f32 %v189_v15, 0.0  ;;  %v1346_v14 = vld [vmem:[%s3069_s3 + $0x520] sm:$0xff]  ;;  %v1349_v15 = vld [vmem:[%s3069_s3 + $0x538] sm:$0xff]  ;;  %v234_v55 = vld [vmem:[%s3069_s3 + $0x150] sm:$0xff]  ;;  %v1757_v10 = vpack.c.bf16 %v1421_v2, %v1418_v1 }
  0xf7   :  { %v608_v20 = vcombine.high %v607_v16, %v607_v16  ;;  %v2461_v21 = vrot.slane %v607_v16, %v2127_v53  ;;  %v216_v16 = vld [vmem:[%s3069_s3 + $0xc0] sm:$0xff]  ;;  %v1808_v0 = vpack.c.bf16 %v237_v58, %v234_v55  ;;  %v243_v5 = vld [vmem:[%s3069_s3 + $0x198] sm:$0xff]  ;;  %v250_v9 = vld [vmem:[%s3069_s3 + $0x1d0] sm:$0xff] }
  0xf8   :  { %v923_v27 = vcombine.low %v190_v18, %v191_v19  ;;  %v226_v18 = vld [vmem:[%s3069_s3 + $0x110] sm:$0xff]  ;;  %v1742_v19 = vpack.c.bf16 %v1349_v15, %v1346_v14  ;;  %v240_v4 = vld [vmem:[%s3069_s3 + $0x180] sm:$0xff]  ;;  %v247_v6 = vld [vmem:[%s3069_s3 + $0x1b8] sm:$0xff] }
  0xf9   :  { %v622_v28 = vrot.slane %v608_v20, %v2127_v53  ;;  %v2475_v29 = vcombine.high %v2461_v21, %v2461_v21  ;;  %v1796_v20 = vpack.c.bf16 %v219_v57, %v216_v16  ;;  %v1427_v14 = vld [vmem:[%s3069_s3 + $0x7a8] sm:$0xff]  ;;  %v1814_v15 = vpack.c.bf16 %v250_v9, %v247_v6  ;;  %v246_v16 = vld [vmem:[%s3069_s3 + $0x1b0] sm:$0xff]  ;;  %v256_v7 = vld [vmem:[%s3069_s3 + $0x200] sm:$0xff] }
  0xfa   :  { %v2496_v39 = vrot.slane %v923_v27, %v2127_v53  ;;  %v1798_v27 = vpack.c.bf16 %v226_v18, %v223_v17  ;;  %v253_v57 = vld [vmem:[%s3069_s3 + $0x1e8] sm:$0xff]  ;;  %v1433_v18 = vld [vmem:[%s3069_s3 + $0x7d8] sm:$0xff]  ;;  %v258_v32 = vld [vmem:[%s3069_s3 + $0x210] sm:$0xff] }
  0xfb   :  { %703 = vmatprep.mubr.f32.mxu0 %v622_v28  ;;  %1460 = vmatmul.mubr.msk.f32.vlgmr.msra.gmra.mrb[0].mxu1 %vm626_vm5, %v2475_v29  ;;  %v261_v33 = vld [vmem:[%s3069_s3 + $0x228] sm:$0xff]  ;;  %v280_v58 = vld [vmem:[%s3069_s3 + $0x2c0] sm:$0xff]  ;;  %v283_v6 = vld [vmem:[%s3069_s3 + $0x2d8] sm:$0xff] }
  0xfc   :  { %1727 = vmatpush3.bf16.msra.mxu1 %v1726_v26  ;;  %704 = vmatmul.mubr.f32.vlgmr.msra.gmra.mrb[0].mxu0 %v2461_v21  ;;  %v931_v43 = vcombine.high %v2496_v39, %v2496_v39  ;;  %v222_v26 = vld [vmem:[%s3069_s3 + $0xf0] sm:$0xff]  ;;  %v1824_v37 = vpack.c.bf16 %v261_v33, %v258_v32  ;;  %v277_v55 = vld [vmem:[%s3069_s3 + $0x2a8] sm:$0xff]  ;;  %v276_v1 = vld [vmem:[%s3069_s3 + $0x2a0] sm:$0xff] }
  0xfd   :  { %845 = vmatprep.mubr.f32.mxu1 %v622_v28  ;;  %1781 = vmatpush1.bf16.msra.mxu0 %v1780_v30  ;;  %v225_v28 = vld [vmem:[%s3069_s3 + $0x108] sm:$0xff]  ;;  %v1406_v30 = vld [vmem:[%s3069_s3 + $0x700] sm:$0xff]  ;;  %v1834_v2 = vpack.c.bf16 %v280_v58, %v277_v55  ;;  %v286_v9 = vld [vmem:[%s3069_s3 + $0x2f0] sm:$0xff] }
  0xfe   :  { %1729 = vmatprep.subr.bf16.mxu1 %v1728_v34  ;;  %1783 = vmatprep.subr.bf16.mxu0 %v1782_v35  ;;  %v2528_v54 = vrot.slane %v931_v43, %v2127_v53  ;;  %v1746_v34 = vpack.c.bf16 %v1355_v25, %v1352_v24  ;;  %v1800_v35 = vpack.c.bf16 %v225_v28, %v222_v26  ;;  %v1412_v43 = vld [vmem:[%s3069_s3 + $0x730] sm:$0xff]  ;;  %v259_v24 = vld [vmem:[%s3069_s3 + $0x218] sm:$0xff] }
  0xff   :  { %v1748_v36 = vpack.c.bf16 %v1409_v31, %v1406_v30  ;;  %v262_v25 = vld [vmem:[%s3069_s3 + $0x230] sm:$0xff]  ;;  %v1439_v30 = vld [vmem:[%s3069_s3 + $0x808] sm:$0xff]  ;;  %v307_v55 = vld [vmem:[%s3069_s3 + $0x398] sm:$0xff] }
 0x100   :  { %1731 = vmatpush3.bf16.msra.mxu1 %v1730_v42  ;;  %1024 = vmatprep.mubr.f32.mxu0 %v2528_v54  ;;  %v231_v42 = vld [vmem:[%s3069_s3 + $0x138] sm:$0xff]  ;;  %v1436_v28 = vld [vmem:[%s3069_s3 + $0x7f0] sm:$0xff]  ;;  %v1822_v31 = vpack.c.bf16 %v262_v25, %v259_v24  ;;  %v288_v25 = vld [vmem:[%s3069_s3 + $0x300] sm:$0xff] }
 0x101   :  { %1785 = vmatpush1.bf16.msra.mxu0 %v1784_v44  ;;  %1733 = vmatprep.subr.bf16.mxu1 %v1732_v45  ;;  %v1415_v44 = vld [vmem:[%s3069_s3 + $0x748] sm:$0xff]  ;;  %v235_v45 = vld [vmem:[%s3069_s3 + $0x158] sm:$0xff]  ;;  %v1804_v48 = vpack.c.bf16 %v231_v42, %v228_v40  ;;  %v264_v42 = vld [vmem:[%s3069_s3 + $0x240] sm:$0xff] }
 0x102   :  { %1787 = vmatprep.subr.bf16.mxu0 %v1786_v49  ;;  %v1752_v49 = vpack.c.bf16 %v1415_v44, %v1412_v43  ;;  %v1806_v52 = vpack.c.bf16 %v238_v46, %v235_v45  ;;  %v1445_v40 = vld [vmem:[%s3069_s3 + $0x838] sm:$0xff]  ;;  %v274_v45 = vld [vmem:[%s3069_s3 + $0x290] sm:$0xff] }
 0x103   :  { %v267_v43 = vld [vmem:[%s3069_s3 + $0x258] sm:$0xff]  ;;  %v1769_v46 = vpack.c.bf16 %v1445_v40, %v1442_v38  ;;  %v298_v32 = vld [vmem:[%s3069_s3 + $0x350] sm:$0xff]  ;;  %v297_v40 = vld [vmem:[%s3069_s3 + $0x348] sm:$0xff] }
 0x104   :  { %1735 = vmatpush3.bf16.msra.mxu1 %v1734_v60  ;;  %v241_v60 = vld [vmem:[%s3069_s3 + $0x188] sm:$0xff]  ;;  %v271_v44 = vld [vmem:[%s3069_s3 + $0x278] sm:$0xff]  ;;  %v310_v58 = vld [vmem:[%s3069_s3 + $0x3b0] sm:$0xff] }
 0x105   :  { %1789 = vmatpush1.bf16.msra.mxu0 %v1788_v61  ;;  %1737 = vmatprep.subr.bf16.mxu1 %v1736_v63  ;;  %v244_v61 = vld [vmem:[%s3069_s3 + $0x1a0] sm:$0xff]  ;;  %v1754_v63 = vpack.c.bf16 %v1367_v51, %v1364_v50  ;;  %v1830_v50 = vpack.c.bf16 %v274_v45, %v271_v44  ;;  %v270_v51 = vld [vmem:[%s3069_s3 + $0x270] sm:$0xff]  ;;  %v203_v24 = vld [vmem:[%s3069_s3 + $0x58] sm:$0xff] }
 0x106   :  { %1791 = vmatprep.subr.bf16.mxu0 %v1790_v3  ;;  %v1810_v3 = vpack.c.bf16 %v244_v61, %v241_v60 }
 0x108   :  { %1739 = vmatpush3.bf16.msra.mxu1 %v1738_v11  ;;  %v2002_v11 = vmov 0.0|0.0  }
 0x109   :  { %1793 = vmatpush1.bf16.msra.mxu0 %v1792_v12  ;;  %1741 = vmatprep.subr.bf16.mxu1 %v1740_v13  ;;  %v1812_v12 = vpack.c.bf16 %v243_v5, %v240_v4  ;;  %v1424_v13 = vld [vmem:[%s3069_s3 + $0x790] sm:$0xff]  ;;  %v245_v5 = vld [vmem:[%s3069_s3 + $0x1a8] sm:$0xff] }
 0x10a   :  { %1795 = vmatprep.subr.bf16.mxu0 %v1794_v56  ;;  %v249_v56 = vld [vmem:[%s3069_s3 + $0x1c8] sm:$0xff]  ;;  %v1760_v8 = vpack.c.bf16 %v1427_v14, %v1424_v13  ;;  %v242_v4 = vld [vmem:[%s3069_s3 + $0x190] sm:$0xff] }
 0x10b   :  { %v1816_v17 = vpack.c.bf16 %v249_v56, %v246_v16  ;;  %v1872_v13 = vpack.c.bf16 %v245_v5, %v242_v4  ;;  %v194_v14 = vld [vmem:[%s3069_s3 + $0x10] sm:$0xff]  ;;  %v1838_v56 = vpack.c.bf16 %v286_v9, %v283_v6  ;;  %v309_v4 = vld [vmem:[%s3069_s3 + $0x3a8] sm:$0xff]  ;;  %v272_v5 = vld [vmem:[%s3069_s3 + $0x280] sm:$0xff] }
 0x10c   :  { %1743 = vmatpush3.bf16.msra.mxu1 %v1742_v19  ;;  %v1818_v19 = vpack.c.bf16 %v256_v7, %v253_v57  ;;  %v282_v16 = vld [vmem:[%s3069_s3 + $0x2d0] sm:$0xff]  ;;  %v285_v57 = vld [vmem:[%s3069_s3 + $0x2e8] sm:$0xff]  ;;  %v248_v7 = vld [vmem:[%s3069_s3 + $0x1c0] sm:$0xff] }
 0x10d   :  { %1797 = vmatpush1.bf16.msra.mxu0 %v1796_v20  ;;  %1745 = vmatprep.subr.bf16.mxu1 %v1744_v22  ;;  %v252_v20 = vld [vmem:[%s3069_s3 + $0x1e0] sm:$0xff]  ;;  %v255_v22 = vld [vmem:[%s3069_s3 + $0x1f8] sm:$0xff]  ;;  %v313_v9 = vld [vmem:[%s3069_s3 + $0x3c8] sm:$0xff] }
 0x10e   :  { %1799 = vmatprep.subr.bf16.mxu0 %v1798_v27  ;;  %v1820_v27 = vpack.c.bf16 %v255_v22, %v252_v20  ;;  %v200_v22 = vld [vmem:[%s3069_s3 + $0x40] sm:$0xff]  ;;  %v275_v6 = vld [vmem:[%s3069_s3 + $0x298] sm:$0xff] }
 0x10f   :  { %v1878_v33 = vpack.c.bf16 %v203_v24, %v200_v22  ;;  %v230_v24 = vld [vmem:[%s3069_s3 + $0x130] sm:$0xff] }
 0x110   :  { %1747 = vmatpush3.bf16.msra.mxu1 %v1746_v34  ;;  %v265_v34 = vld [vmem:[%s3069_s3 + $0x248] sm:$0xff] }
 0x111   :  { %1801 = vmatpush1.bf16.msra.mxu0 %v1800_v35  ;;  %1749 = vmatprep.subr.bf16.mxu1 %v1748_v36  ;;  %v268_v35 = vld [vmem:[%s3069_s3 + $0x260] sm:$0xff]  ;;  %v1766_v36 = vpack.c.bf16 %v1439_v30, %v1436_v28  ;;  %v254_v28 = vld [vmem:[%s3069_s3 + $0x1f0] sm:$0xff]  ;;  %v257_v30 = vld [vmem:[%s3069_s3 + $0x208] sm:$0xff] }
 0x112   :  { %1803 = vmatprep.subr.bf16.mxu0 %v1802_v41  ;;  %v1826_v41 = vpack.c.bf16 %v268_v35, %v265_v34  ;;  %v1880_v35 = vpack.c.bf16 %v257_v30, %v254_v28  ;;  %v321_v28 = vld [vmem:[%s3069_s3 + $0x408] sm:$0xff]  ;;  %v284_v30 = vld [vmem:[%s3069_s3 + $0x2e0] sm:$0xff] }
 0x114   :  { %1751 = vmatpush3.bf16.msra.mxu1 %v1750_v47  ;;  %v1828_v47 = vpack.c.bf16 %v267_v43, %v264_v42  ;;  %v263_v42 = vld [vmem:[%s3069_s3 + $0x238] sm:$0xff]  ;;  %v301_v43 = vld [vmem:[%s3069_s3 + $0x368] sm:$0xff] }
 0x115   :  { %1805 = vmatpush1.bf16.msra.mxu0 %v1804_v48  ;;  %1753 = vmatprep.subr.bf16.mxu1 %v1752_v49  ;;  %v1448_v48 = vld [vmem:[%s3069_s3 + $0x850] sm:$0xff]  ;;  %v1451_v49 = vld [vmem:[%s3069_s3 + $0x868] sm:$0xff] }
 0x116   :  { %1807 = vmatprep.subr.bf16.mxu0 %v1806_v52  ;;  %v273_v52 = vld [vmem:[%s3069_s3 + $0x288] sm:$0xff]  ;;  %v1772_v60 = vpack.c.bf16 %v1451_v49, %v1448_v48  ;;  %v300_v48 = vld [vmem:[%s3069_s3 + $0x360] sm:$0xff] }
 0x117   :  { %v1832_v61 = vpack.c.bf16 %v273_v52, %v270_v51  ;;  %v266_v51 = vld [vmem:[%s3069_s3 + $0x250] sm:$0xff]  ;;  %v269_v52 = vld [vmem:[%s3069_s3 + $0x268] sm:$0xff] }
 0x118   :  { %1755 = vmatpush3.bf16.msra.mxu1 %v1754_v63  ;;  %v1454_v63 = vld [vmem:[%s3069_s3 + $0x880] sm:$0xff] }
 0x119   :  { %1809 = vmatpush1.bf16.msra.mxu0 %v1808_v0  ;;  %1756 = vmatprep.subr.bf16.mxu1 %v2002_v11  ;;  %v1457_v0 = vld [vmem:[%s3069_s3 + $0x898] sm:$0x1] }
 0x11a   :  { %1811 = vmatprep.subr.bf16.mxu0 %v1810_v3  ;;  %v279_v3 = vld [vmem:[%s3069_s3 + $0x2b8] sm:$0xff] }
 0x11b   :  { %846 = vmatmul.mubr.f32.vlgmr.msra.gmra.mrb[2].mxu1 %v2461_v21  ;;  %v1430_v21 = vld [vmem:[%s3069_s3 + $0x7c0] sm:$0xff] }
 0x11c   :  { %1758 = vmatpush3.bf16.msra.mxu1 %v1757_v10  ;;  %1596 = vmatprep.mubr.msk.f32.mxu1 %vm2003_vm6, %v2000_v62  ;;  %v1763_v26 = vpack.c.bf16 %v1433_v18, %v1430_v21  ;;  %v1775_v10 = vpack.c.bf16 %v1457_v0, %v1454_v63  ;;  %v292_v21 = vld [vmem:[%s3069_s3 + $0x320] sm:$0xff]  ;;  %v1888_v63 = vpack.c.bf16 %v269_v52, %v266_v51  ;;  %v218_v0 = vld [vmem:[%s3069_s3 + $0xd0] sm:$0xff]  ;;  %v311_v52 = vld [vmem:[%s3069_s3 + $0x3b8] sm:$0xff] }
 0x11d   :  { %1813 = vmatpush1.bf16.msra.mxu0 %v1812_v12  ;;  %1759 = vmatprep.subr.bf16.mxu1 %v2002_v11  ;;  %v1836_v12 = vpack.c.bf16 %v279_v3, %v276_v1  ;;  %v221_v1 = vld [vmem:[%s3069_s3 + $0xe8] sm:$0xff]  ;;  %v1854_v3 = vpack.c.bf16 %v310_v58, %v307_v55 }
 0x11e   :  { %1815 = vmatprep.subr.bf16.mxu0 %v1814_v15  ;;  %v197_v15 = vld [vmem:[%s3069_s3 + $0x28] sm:$0xff] }
 0x11f   :  { %v1874_v18 = vpack.c.bf16 %v197_v15, %v194_v14  ;;  %v1892_v14 = vpack.c.bf16 %v275_v6, %v272_v5  ;;  %v224_v15 = vld [vmem:[%s3069_s3 + $0x100] sm:$0xff]  ;;  %v317_v58 = vld [vmem:[%s3069_s3 + $0x3e8] sm:$0xff] }
 0x120   :  { %1761 = vmatpush3.bf16.msra.mxu1 %v1760_v8  ;;  %v251_v8 = vld [vmem:[%s3069_s3 + $0x1d8] sm:$0xff] }
 0x121   :  { %1817 = vmatpush1.bf16.msra.mxu0 %v1816_v17  ;;  %1762 = vmatprep.subr.bf16.mxu1 %v2002_v11  ;;  %v289_v17 = vld [vmem:[%s3069_s3 + $0x308] sm:$0xff]  ;;  %v1876_v20 = vpack.c.bf16 %v251_v8, %v248_v7  ;;  %v315_v7 = vld [vmem:[%s3069_s3 + $0x3d8] sm:$0xff]  ;;  %v278_v8 = vld [vmem:[%s3069_s3 + $0x2b0] sm:$0xff] }
 0x122   :  { %1819 = vmatprep.subr.bf16.mxu0 %v1818_v19  ;;  %v1840_v19 = vpack.c.bf16 %v285_v57, %v282_v16  ;;  %v227_v16 = vld [vmem:[%s3069_s3 + $0x118] sm:$0xff] }
 0x124   :  { %1764 = vmatpush3.bf16.msra.mxu1 %v1763_v26  ;;  %v1842_v26 = vpack.c.bf16 %v292_v21, %v289_v17  ;;  %v281_v17 = vld [vmem:[%s3069_s3 + $0x2c8] sm:$0xff]  ;;  %v319_v21 = vld [vmem:[%s3069_s3 + $0x3f8] sm:$0xff] }
 0x125   :  { %1821 = vmatpush1.bf16.msra.mxu0 %v1820_v27  ;;  %1765 = vmatprep.subr.bf16.mxu1 %v2002_v11  ;;  %v291_v27 = vld [vmem:[%s3069_s3 + $0x318] sm:$0xff]  ;;  %v1896_v22 = vpack.c.bf16 %v281_v17, %v278_v8 }
 0x126   :  { %1823 = vmatprep.subr.bf16.mxu0 %v1822_v31  ;;  %v295_v31 = vld [vmem:[%s3069_s3 + $0x338] sm:$0xff]  ;;  %v1844_v34 = vpack.c.bf16 %v291_v27, %v288_v25  ;;  %v233_v25 = vld [vmem:[%s3069_s3 + $0x148] sm:$0xff] }
 0x127   :  { %v1846_v38 = vpack.c.bf16 %v298_v32, %v295_v31  ;;  %v287_v31 = vld [vmem:[%s3069_s3 + $0x2f8] sm:$0xff]  ;;  %v325_v32 = vld [vmem:[%s3069_s3 + $0x428] sm:$0xff] }
 0x128   :  { %1767 = vmatpush3.bf16.msra.mxu1 %v1766_v36  ;;  %v209_v36 = vld [vmem:[%s3069_s3 + $0x88] sm:$0xff] }
 0x129   :  { %1825 = vmatpush1.bf16.msra.mxu0 %v1824_v37  ;;  %1768 = vmatprep.subr.bf16.mxu1 %v2002_v11  ;;  %v294_v37 = vld [vmem:[%s3069_s3 + $0x330] sm:$0xff] }
 0x12a   :  { %1827 = vmatprep.subr.bf16.mxu0 %v1826_v41  ;;  %v260_v41 = vld [vmem:[%s3069_s3 + $0x220] sm:$0xff]  ;;  %v1848_v44 = vpack.c.bf16 %v297_v40, %v294_v37  ;;  %v239_v37 = vld [vmem:[%s3069_s3 + $0x178] sm:$0xff] }
 0x12b   :  { %v1884_v45 = vpack.c.bf16 %v263_v42, %v260_v41  ;;  %v324_v40 = vld [vmem:[%s3069_s3 + $0x420] sm:$0xff]  ;;  %v327_v41 = vld [vmem:[%s3069_s3 + $0x438] sm:$0x1] }
 0x12c   :  { %1770 = vmatpush3.bf16.msra.mxu1 %v1769_v46  ;;  %v212_v46 = vld [vmem:[%s3069_s3 + $0xa0] sm:$0xff] }
 0x12d   :  { %1829 = vmatpush1.bf16.msra.mxu0 %v1828_v47  ;;  %1771 = vmatprep.subr.bf16.mxu1 %v2002_v11  ;;  %v215_v47 = vld [vmem:[%s3069_s3 + $0xb8] sm:$0xff] }
 0x12e   :  { %1831 = vmatprep.subr.bf16.mxu0 %v1830_v50  ;;  %v303_v50 = vld [vmem:[%s3069_s3 + $0x378] sm:$0xff] }
 0x130   :  { %1773 = vmatpush3.bf16.msra.mxu1 %v1772_v60  ;;  %v1886_v60 = vpack.c.bf16 %v215_v47, %v212_v46  ;;  %v299_v46 = vld [vmem:[%s3069_s3 + $0x358] sm:$0xff] }
 0x131   :  { %1833 = vmatpush1.bf16.msra.mxu0 %v1832_v61  ;;  %1774 = vmatprep.subr.bf16.mxu1 %v2002_v11  ;;  %v1852_v61 = vpack.c.bf16 %v303_v50, %v300_v48  ;;  %v305_v50 = vld [vmem:[%s3069_s3 + $0x388] sm:$0xff] }
 0x132   :  { %1835 = vmatprep.subr.bf16.mxu0 %v1834_v2  ;;  %v306_v2 = vld [vmem:[%s3069_s3 + $0x390] sm:$0xff] }
 0x134   :  { %1777 = vmatpush3.bf16.msk.msra.mxu1 %vm2416_vm4, %v1775_v10  ;;  %v316_v10 = vld [vmem:[%s3069_s3 + $0x3e0] sm:$0xff] }
 0x135   :  { %1837 = vmatpush1.bf16.msra.mxu0 %v1836_v12  ;;  %1873 = vmatprep.subr.bf16.mxu1 %v1872_v13  ;;  %v1890_v12 = vpack.c.bf16 %v221_v1, %v218_v0  ;;  %v1856_v13 = vpack.c.bf16 %v309_v4, %v306_v2  ;;  %v1858_v57 = vpack.c.bf16 %v316_v10, %v313_v9  ;;  %v326_v1 = vld [vmem:[%s3069_s3 + $0x430] sm:$0xff]  ;;  %v329_v2 = vld [vmem:[%s3069_s3 + $0x448] sm:$0x1] }
 0x136   :  { %1839 = vmatprep.subr.bf16.mxu0 %v1838_v56  ;;  %v312_v56 = vld [vmem:[%s3069_s3 + $0x3c0] sm:$0xff] }
 0x137   :  { %1597 = vmatmul.mubr.msk.f32.vlgmr.msra.gmra.mrb[4].mxu1 %vm626_vm5, %v2475_v29  ;;  %v206_v29 = vld [vmem:[%s3069_s3 + $0x70] sm:$0xff] }
 0x138   :  { %1875 = vmatpush3.bf16.msra.mxu1 %v1874_v18  ;;  %1166 = vmatprep.mubr.f32.mxu1 %v2528_v54  ;;  %v2857_v54 = vrot.slane %v2496_v39, %v2127_v53  ;;  %v304_v53 = vld [vmem:[%s3069_s3 + $0x380] sm:$0xff]  ;;  %v1882_v39 = vpack.c.bf16 %v209_v36, %v206_v29  ;;  %v322_v18 = vld [vmem:[%s3069_s3 + $0x410] sm:$0xff]  ;;  %v1900_v29 = vpack.c.bf16 %v287_v31, %v284_v30  ;;  %v2004_v31 = vmov 1983009808  }
 0x139   :  { %1841 = vmatpush1.bf16.msra.mxu0 %v1840_v19  ;;  %1877 = vmatprep.subr.bf16.mxu1 %v1876_v20  ;;  %v1850_v49 = vpack.c.bf16 %v304_v53, %v301_v43  ;;  %v1894_v19 = vpack.c.bf16 %v227_v16, %v224_v15  ;;  %v1860_v20 = vpack.c.bf16 %v315_v7, %v312_v56  ;;  %v236_v36 = vld [vmem:[%s3069_s3 + $0x160] sm:$0xff]  ;;  %v290_v53 = vld [vmem:[%s3069_s3 + $0x310] sm:$0xff]  ;;  %v1246_v7 = vsub.s32 0, %v2106_v23 }
 0x13a   :  { %1843 = vmatprep.subr.bf16.mxu0 %v1842_v26  ;;  %v318_v26 = vld [vmem:[%s3069_s3 + $0x3f0] sm:$0xff]  ;;  %v1862_v27 = vpack.c.bf16 %v322_v18, %v319_v21  ;;  %v1902_v42 = vpack.c.bf16 %v239_v37, %v236_v36  ;;  %v1869_v43 = vpack.c.bf16 %v327_v41, %v324_v40  ;;  %v946_v47 = vcombine.high %v2857_v54, %v2857_v54 }
 0x13b   :  { %v1247_v17 = vrot.slane %v1242_v59, %v1246_v7 }
 0x13c   :  { %1025 = vmatmul.mubr.f32.vlgmr.msra.gmra.mrb[2].mxu0 %v2857_v54  ;;  %1879 = vmatpush3.bf16.msra.mxu1 %v1878_v33  ;;  %v328_v33 = vld [vmem:[%s3069_s3 + $0x440] sm:$0x1] }
 0x13d   :  { %1845 = vmatpush1.bf16.msra.mxu0 %v1844_v34  ;;  %1881 = vmatprep.subr.bf16.mxu1 %v1880_v35  ;;  %v1898_v34 = vpack.c.bf16 %v233_v25, %v230_v24  ;;  %v1864_v35 = vpack.c.bf16 %v321_v28, %v318_v26 }
 0x13e   :  { %1847 = vmatprep.subr.bf16.mxu0 %v1846_v38  ;;  %1095 = vmatprep.mubr.f32.mxu0 %v2000_v62  ;;  %v1866_v38 = vpack.c.bf16 %v328_v33, %v325_v32  ;;  %v1267_v32 = vunpack.c.l.s4 %v2004_v31  ;;  %v1254_v33 = vsub.s32 2, %v2106_v23 }
 0x140   :  { %1883 = vmatpush3.bf16.msra.mxu1 %v1882_v39  ;;  %v293_v39 = vld [vmem:[%s3069_s3 + $0x328] sm:$0xff] }
 0x141   :  { %1849 = vmatpush1.bf16.msra.mxu0 %v1848_v44  ;;  %1885 = vmatprep.subr.bf16.mxu1 %v1884_v45  ;;  %v1905_v44 = vpack.c.bf16 %v293_v39, %v290_v53  ;;  %v296_v45 = vld [vmem:[%s3069_s3 + $0x340] sm:$0xff] }
 0x142   :  { %1851 = vmatprep.subr.bf16.mxu0 %v1850_v49  ;;  %v1908_v48 = vpack.c.bf16 %v299_v46, %v296_v45  ;;  %v302_v49 = vld [vmem:[%s3069_s3 + $0x370] sm:$0xff] }
 0x143   :  { %v1911_v51 = vpack.c.bf16 %v305_v50, %v302_v49 }
 0x144   :  { %1887 = vmatpush3.bf16.msra.mxu1 %v1886_v60 }
 0x145   :  { %1853 = vmatpush1.bf16.msra.mxu0 %v1852_v61  ;;  %1889 = vmatprep.subr.bf16.mxu1 %v1888_v63  ;;  %v320_v61 = vld [vmem:[%s3069_s3 + $0x400] sm:$0xff]  ;;  %v323_v63 = vld [vmem:[%s3069_s3 + $0x418] sm:$0xff] }
 0x146   :  { %1855 = vmatprep.subr.bf16.mxu0 %v1854_v3  ;;  %v1920_v0 = vpack.c.bf16 %v323_v63, %v320_v61  ;;  %v1923_v3 = vpack.c.bf16 %v329_v2, %v326_v1 }
 0x148   :  { %1891 = vmatpush3.bf16.msra.mxu1 %v1890_v12 }
 0x149   :  { %1857 = vmatpush1.bf16.msra.mxu0 %v1856_v13  ;;  %1893 = vmatprep.subr.bf16.mxu1 %v1892_v14 }
 0x14a   :  { %1859 = vmatprep.subr.bf16.mxu0 %v1858_v57 }
 0x14c   :  { %1895 = vmatpush3.bf16.msra.mxu1 %v1894_v19 }
 0x14d   :  { %1861 = vmatpush1.bf16.msra.mxu0 %v1860_v20  ;;  %1897 = vmatprep.subr.bf16.mxu1 %v1896_v22 }
 0x14e   :  { %1863 = vmatprep.subr.bf16.mxu0 %v1862_v27 }
 0x150   :  { %1899 = vmatpush3.bf16.msra.mxu1 %v1898_v34  ;;  %v1268_v34 = vunpack.c.0.s8 %v1267_v32 }
 0x151   :  { %1865 = vmatpush1.bf16.msra.mxu0 %v1864_v35  ;;  %1901 = vmatprep.subr.bf16.mxu1 %v1900_v29  ;;  %v1255_v35 = vrot.slane %v1242_v59, %v1254_v33 }
 0x152   :  { %1868 = vmatprep.subr.msk.bf16.mxu0 %vm2416_vm4, %v1866_v38  ;;  %v1271_v38 = vsub.s32 %v1268_v34, %v2106_v23 }
 0x154   :  { %1903 = vmatpush3.bf16.msra.mxu1 %v1902_v42 }
 0x155   :  { %1871 = vmatpush1.bf16.msk.msra.mxu0 %vm2416_vm4, %v1869_v43  ;;  %1904 = vmatprep.subr.bf16.mxu1 %v2002_v11 }
 0x157   :  { %1167 = vmatmul.mubr.f32.vlgmr.msra.gmra.mrb[6].mxu1 %v2857_v54  ;;  %v308_v54 = vld [vmem:[%s3069_s3 + $0x3a0] sm:$0xff] }
 0x158   :  { %1465 = vmatmul.mubr.msk.f32.vlgmr.msra.gmra.mrb[2].mxu0 %vm626_vm5, %v946_v47  ;;  %1906 = vmatpush3.bf16.msra.mxu1 %v1905_v44  ;;  %v1914_v55 = vpack.c.bf16 %v311_v52, %v308_v54 }
 0x159   :  { %1907 = vmatprep.subr.bf16.mxu1 %v2002_v11  ;;  %1627 = vmatprep.mubr.msk.f32.mxu1 %vm2003_vm6, %v2000_v62  ;;  %v314_v62 = vld [vmem:[%s3069_s3 + $0x3d0] sm:$0xff] }
 0x15a   :  { %v1917_v60 = vpack.c.bf16 %v317_v58, %v314_v62 }
 0x15c   :  { %1909 = vmatpush3.bf16.msra.mxu1 %v1908_v48 }
 0x15d   :  { %1910 = vmatprep.subr.bf16.mxu1 %v2002_v11 }
 0x160   :  { %1912 = vmatpush3.bf16.msra.mxu1 %v1911_v51 }
 0x161   :  { %1913 = vmatprep.subr.bf16.mxu1 %v2002_v11 }
 0x164   :  { %1915 = vmatpush3.bf16.msra.mxu1 %v1914_v55 }
 0x165   :  { %1916 = vmatprep.subr.bf16.mxu1 %v2002_v11 }
 0x168   :  { %1918 = vmatpush3.bf16.msra.mxu1 %v1917_v60 }
 0x169   :  { %1919 = vmatprep.subr.bf16.mxu1 %v2002_v11 }
 0x16c   :  { %1921 = vmatpush3.bf16.msra.mxu1 %v1920_v0 }
 0x16d   :  { %1922 = vmatprep.subr.bf16.mxu1 %v2002_v11  ;;  %v1250_v11 = vsub.s32 1, %v2106_v23 }
 0x16f   :  { %v1251_v19 = vrot.slane %v1242_v59, %v1250_v11 }
 0x170   :  { %1925 = vmatpush3.bf16.msk.msra.mxu1 %vm2416_vm4, %v1923_v3 }
 0x173   :  { %1628 = vmatmul.mubr.msk.f32.vlgmr.msra.gmra.mrb[8].mxu1 %vm626_vm5, %v946_v47 }
 0x1ce   :  { %v776_v4 = vpop.f32.mrb[0].mxu1 }
 0x1cf   :  { %v705_v5 = vpop.f32.mrb[0].mxu0  ;;  %v778_v6 = vpop.f32.mrb[1].mxu1 }
 0x1d0   :  { %v777_v9 = vadd.f32 %v776_v4, %v705_v5  ;;  %v707_v10 = vpop.f32.mrb[1].mxu0 }
 0x1d1   :  { %v779_v12 = vadd.f32 %v778_v6, %v707_v10 }
 0x1ee   :  { %v1500_v13 = vpop.f32.mrb[2].mxu1 }
 0x1ef   :  { %v1501_v14 = vpop.f32.mrb[3].mxu1 }
 0x1f0   :  { %v1502_v15 = vadd.f32 %v1501_v14, %v1500_v13 }
 0x20a   :  { %v917_v16 = vpop.f32.mrb[4].mxu1 }
 0x20b   :  { %v918_v56 = vadd.f32 %v1502_v15, %v917_v16  ;;  %v1598_v57 = vpop.f32.mrb[5].mxu1 }
 0x22a   :  { %v1550_v8 = vpop.f32.mrb[6].mxu1 }
 0x22b   :  { %v1097_v21 = vpop.f32.mrb[2].mxu0  ;;  %v1551_v18 = vpop.f32.mrb[7].mxu1 }
 0x22c   :  { %v1927_v20 = vadd.f32 %v1097_v21, %v777_v9  ;;  %v1552_v22 = vadd.f32 %v1551_v18, %v1550_v8  ;;  %v1099_v24 = vpop.f32.mrb[3].mxu0 }
 0x22d   :  { %v1929_v25 = vadd.f32 %v1099_v24, %v779_v12 }
 0x22e   :  { %v1259_v26 = vadd.f32 %v1927_v20, %v1247_v17  ;;  %v1169_v27 = vadd.f32 %v1552_v22, %v918_v56 }
 0x22f   :  { %v1260_v28 = vadd.f32 %v1929_v25, %v1251_v19 }
 0x231   :  { %v1265_v30 = vcombine.low %v1259_v26, %v1260_v28 }
 0x233   :  { %v1272_v41 = vrot.slane %v1265_v30, %v1271_v38 }
 0x246   :  { %v1238_v29 = vpop.f32.mrb[8].mxu1 }
 0x247   :  { %v1239_v36 = vadd.f32 %v1238_v29, %v1169_v27  ;;  %v1629_v37 = vpop.f32.mrb[9].mxu1 }
 0x249   :  { %v1261_v40 = vadd.f32 %v1255_v35, %v1239_v36 }
 0x24b   :  { %v1279_v42 = vrot.slane %v1261_v40, %v1271_v38 }
 0x24d   :  { %v1280_v43 = vcombine.low %v1272_v41, %v1279_v42 }
 0x24f   :  { %1286 = vst.msk [vmem:[#allocation7] sm:$0x3f] %vm1285_vm10, %v1280_v43 }
 0x250   :  { %1980 = shalt.err (!%p1977_p0)
}
 0x251   :  { %s1981_s23 = scalar_lea.hbm %s3071_s5, 96 }
 0x252   :  { %p1982_p1 = scmp.ne.s32.totalorder %s3071_s5, %s1981_s23  ;;  %p1985_p2 = scmp.lt.u32.totalorder %s1981_s23, %s3071_s5 }
 0x254   :  { %p1987_p3 = pnand %p1985_p2, %p1982_p1 }
 0x256   :  { %1990 = shalt.err (!%p1987_p3)
}
 0x257   :  { %1296 = dma.vmem_to_hbm [thread:$0]  %s1294_s28, 96, %s3071_s5, [#allocation3]  }
 0x258   :  { %1995 = dma.done.wait [#allocation3], 96  }
 0x259   :  { %1996 = vsyncadd [#allocation3], 4294967200 }
 0x25a   :  { %1300 = vsyncpa [#allocation3], 1 }
 0x25b   :  { %1301 = vsyncpa [#allocation4], 1 }
 0x25c   :  { %1302 = vsyncpa [#allocation6], 1 }

</bundles_post_ra>
